<compile_context>
chip_gen: v7x
topology: tpu7x:2x2x1
jax: 0.10.0
libtpu: 0.0.40
codegen_flags: <defaults>
</compile_context>

<pallas_src>
import jax
import jax.numpy as jnp
from jax.experimental import pallas as pl
from jax.experimental.pallas import tpu as pltpu

KERNEL_SIZE = 3
NUM_CHANNELS = (25, 50, 100)          # module default
DILATIONS = (1, 2, 4)                 # 2**i for i in range(3)
CPAD = 128                            # every channel dim is zero-padded to one lane tile


def _round_up(n, m):
    return ((n + m - 1) // m) * m


# ---------------------------------------------------------------------------
# Kernel
# ---------------------------------------------------------------------------
def tcn_kernel(x_ref,
               w1, b1, d1w, d1b,
               w2, b2, d2w, d2b,
               w3, b3, d3w, d3b,
               fcw, fcb,
               out_ref):
    bt, t, c = x_ref.shape                      # (Bt, T, 128)
    r = bt * t
    xf = x_ref[...].reshape(r, c)               # flattened rows: (Bt*T, 128) f32
    # Time index of every flattened row (batch-periodic), for the causal masks.
    t_idx = jax.lax.broadcasted_iota(jnp.int32, (r, 1), 0) % t

    def dense_block(hf, w_ref, b_ref, dw_ref, db_ref):
        # Block 1: its three taps were packed into one lane tile host-side, so the conv
        # and its 1x1 residual are each a single lane-dense (r,128)@(128,128) bf16 dot.
        hb = hf.astype(jnp.bfloat16)
        out = jnp.dot(hb, w_ref[...], preferred_element_type=jnp.float32) + b_ref[...]
        out = jnp.maximum(out, 0.0)                                   # conv + chomp + relu
        res = jnp.dot(hb, dw_ref[...], preferred_element_type=jnp.float32) + db_ref[...]
        return jnp.maximum(out + res, 0.0)                            # relu(out + res)

    def temporal_block(hf, w_ref, b_ref, dw_ref, db_ref, dilation):
        # Causal K=3 conv: tap j reads h[t - (K-1-j)*dilation].  The offset-0 tap is hf
        # itself; shifted taps are realised with pltpu.roll along the sublane (row) axis
        # plus a time mask, so they never leave vregs.  One 128x128 MXU push per tap,
        # accumulated in f32 against static 128-row slices of the stacked weight.
        hb = hf.astype(jnp.bfloat16)
        acc = jnp.dot(hb, w_ref[pl.ds((KERNEL_SIZE - 1) * c, c), :],
                      preferred_element_type=jnp.float32)
        for j in range(KERNEL_SIZE - 1):
            off = (KERNEL_SIZE - 1 - j) * dilation                    # static shift
            tap = pltpu.roll(hf, shift=off, axis=0)                   # row i <- row i-off
            tap = jnp.where(t_idx >= off, tap, 0.0)                   # zero wrapped / pre-history rows
            acc = acc + jnp.dot(tap.astype(jnp.bfloat16),
                                w_ref[pl.ds(j * c, c), :],
                                preferred_element_type=jnp.float32)
        out = jnp.maximum(acc + b_ref[...], 0.0)                      # conv + chomp + relu
        res = jnp.dot(hb, dw_ref[...], preferred_element_type=jnp.float32) + db_ref[...]
        return jnp.maximum(out + res, 0.0)                            # relu(out + res)

    h = dense_block(xf, w1, b1, d1w, d1b)                             # dilation 1 (pre-packed taps)
    h = temporal_block(h, w2, b2, d2w, d2b, DILATIONS[1])             # dilation 2
    h = temporal_block(h, w3, b3, d3w, d3b, DILATIONS[2])             # dilation 4

    # Sum-pool over time (the 1/T of the mean is folded into fcw) + classifier head.
    pooled = jnp.sum(h.reshape(bt, t, c), axis=1)                     # (Bt, 128) f32
    out_ref[...] = (jnp.dot(pooled.astype(jnp.bfloat16), fcw[...],
                            preferred_element_type=jnp.float32) + fcb[...])


# ---------------------------------------------------------------------------
# Wrapper
# ---------------------------------------------------------------------------
def tcn_forward(x, params, num_classes, block_batch=32):
    """x: (B, T, input_size) float32 — the PyTorch module's input (pre-permute).

    params: flat tuple from pack_params (padded, bf16 weights, kernel-arg order).
    """
    B, T, C0 = x.shape
    assert KERNEL_SIZE * C0 <= CPAD, "block-1 tap packing needs kernel_size*input_size <= 128"

    # --- host-side glue ------------------------------------------------------
    # Block-1 im2col: the three dilation-1 causal taps of the raw input are packed into
    # one 128-lane tile (tap j -> lanes [j*C0, (j+1)*C0)); the kernel's first conv then
    # uses a single 128-wide contraction.
    taps = []
    for j in range(KERNEL_SIZE):
        off = (KERNEL_SIZE - 1 - j) * DILATIONS[0]
        taps.append(jnp.pad(x, ((0, 0), (off, 0), (0, 0)))[:, :T, :])
    xp = jnp.concatenate(taps, axis=-1)                                  # (B, T, 3*C0)
    xp = jnp.pad(xp, ((0, 0), (0, 0), (0, CPAD - KERNEL_SIZE * C0)))     # lane-dense

    # Fold the 1/T mean-pool scale into the FC weight (kernel does a plain sum-pool).
    fcw = (params[-2] * (1.0 / T)).astype(jnp.bfloat16)
    params = params[:-2] + (fcw, params[-1])

    # Batch tiling: Bt rows per grid step (multiple of 8, no larger than the padded batch
    # so tiny batches don't compute pure padding).  For very long T on v7x (64 MiB VMEM)
    # shrink block_batch or raise vmem_limit_bytes.
    Bt = max(8, (min(block_batch, _round_up(B, 8)) // 8) * 8)
    Bp = _round_up(B, Bt)
    xp = jnp.pad(xp, ((0, Bp - B), (0, 0), (0, 0)))

    in_specs = [pl.BlockSpec((Bt, T, CPAD), lambda b: (b, 0, 0))]
    in_specs += [pl.BlockSpec(p.shape, lambda b: (0, 0)) for p in params]  # constant index: fetched once
    out_spec = pl.BlockSpec((Bt, CPAD), lambda b: (b, 0))

    out = pl.pallas_call(
        tcn_kernel,
        grid=(Bp // Bt,),
        in_specs=in_specs,
        out_specs=out_spec,
        out_shape=jax.ShapeDtypeStruct((Bp, CPAD), jnp.float32),
        compiler_params=pltpu.CompilerParams(
            dimension_semantics=("parallel",)),
    )(xp, *params)
    return out[:B, :num_classes]


# ---------------------------------------------------------------------------
# Parameters: raw (PyTorch-shaped, post weight-norm) + packing into kernel layout
# ---------------------------------------------------------------------------
def init_raw_params(key, input_size, num_classes,
                    num_channels=NUM_CHANNELS, kernel_size=KERNEL_SIZE):
    """Deterministic synthetic parameters at the PyTorch module's true sizes.

    With the default channel plan every block has in != out, so the 1x1 downsample conv
    always exists (for an in == out block one would pass dw = I, db = 0).
    """
    n_blocks = len(num_channels)
    keys = iter(list(jax.random.split(key, n_blocks * 5 + 2)))
    blocks = []
    in_c = input_size
    for out_c in num_channels:
        # weight_norm(Conv1d): v is the direction, g the per-out-channel magnitude.
        v = 0.01 * jax.random.normal(next(keys), (out_c, in_c, kernel_size), jnp.float32)
        g = 1.0 + 0.1 * jax.random.normal(next(keys), (out_c,), jnp.float32)
        norm = jnp.sqrt(jnp.sum(v * v, axis=(1, 2), keepdims=True))
        w_eff = g[:, None, None] * v / norm                       # (out, in, k) effective weight
        b = 0.01 * jax.random.normal(next(keys), (out_c,), jnp.float32)
        dw = 0.01 * jax.random.normal(next(keys), (out_c, in_c), jnp.float32)   # 1x1 downsample
        db = 0.01 * jax.random.normal(next(keys), (out_c,), jnp.float32)
        blocks.append((w_eff, b, dw, db))
        in_c = out_c
    fcw = 0.1 * jax.random.normal(next(keys), (num_classes, in_c), jnp.float32)  # torch Linear (out, in)
    fcb = 0.1 * jax.random.normal(next(keys), (num_classes,), jnp.float32)
    return blocks, (fcw, fcb)


def pack_params(blocks, fc, cpad=CPAD):
    """Pad all channel dims to `cpad`; matmul weights as bf16, biases as (1, cpad) f32.

    Block 0 (its input taps are packed host-side into one lane tile): the conv weight is
    (cpad, cpad) with tap j's (in_c, out_c) slab at rows [j*in_c, (j+1)*in_c), and the
    1x1 downsample weight sits at the offset-0 tap's rows.  Later blocks: the 3 taps are
    stacked along the contraction dim -> (3*cpad, cpad).
    """
    params = []
    for i, (w_eff, b, dw, db) in enumerate(blocks):
        out_c, in_c, k = w_eff.shape
        if i == 0:
            assert k * in_c <= cpad
            w = jnp.zeros((cpad, cpad), jnp.float32)
            for j in range(k):
                w = w.at[j * in_c:(j + 1) * in_c, :out_c].set(w_eff[:, :, j].T)
            dwp = jnp.zeros((cpad, cpad), jnp.float32)
            dwp = dwp.at[(k - 1) * in_c:k * in_c, :out_c].set(dw.T)
        else:
            w = jnp.transpose(w_eff, (2, 1, 0))                               # (k, in, out)
            w = jnp.pad(w, ((0, 0), (0, cpad - in_c), (0, cpad - out_c)))
            w = w.reshape(k * cpad, cpad)
            dwp = jnp.pad(dw.T, ((0, cpad - in_c), (0, cpad - out_c)))
        params.append(w.astype(jnp.bfloat16))
        params.append(jnp.pad(b, (0, cpad - out_c))[None, :].astype(jnp.float32))
        params.append(dwp.astype(jnp.bfloat16))
        params.append(jnp.pad(db, (0, cpad - out_c))[None, :].astype(jnp.float32))
    fcw, fcb = fc
    nc, c_last = fcw.shape
    # FC weight kept f32 here; the wrapper folds the 1/T pool scale in and casts to bf16.
    params.append(jnp.pad(fcw.T, ((0, cpad - c_last), (0, cpad - nc))).astype(jnp.float32))
    params.append(jnp.pad(fcb, (0, cpad - nc))[None, :].astype(jnp.float32))
    return tuple(params)


# ---------------------------------------------------------------------------
# Pure-JAX reference (identical math, unpadded, f32) for correctness checking
# ---------------------------------------------------------------------------
def reference_forward(x, blocks, fc):
    h = x
    for i, (w_eff, b, dw, db) in enumerate(blocks):
        dil = DILATIONS[i]
        B, T, _ = h.shape
        out_c = w_eff.shape[0]
        acc = jnp.zeros((B, T, out_c), jnp.float32)
        for j in range(KERNEL_SIZE):
            off = (KERNEL_SIZE - 1 - j) * dil
            hs = jnp.pad(h, ((0, 0), (off, 0), (0, 0)))[:, :T, :]
            acc = acc + jnp.einsum('btc,oc->bto', hs, w_eff[:, :, j])
        out = jnp.maximum(acc + b, 0.0)
        res = jnp.einsum('btc,oc->bto', h, dw) + db
        h = jnp.maximum(out + res, 0.0)
    pooled = jnp.mean(h, axis=1)
    fcw, fcb = fc
    return pooled @ fcw.T + fcb


if __name__ == "__main__":
    B, T, input_size, num_classes = 2, 16, 4, 2
    key = jax.random.PRNGKey(0)
    kx, kp = jax.random.split(key)

    # PyTorch module input is (batch, seq_len, input_size); it permutes internally.
    x = jax.random.normal(kx, (B, T, input_size), jnp.float32)
    blocks, fc = init_raw_params(kp, input_size, num_classes)
    params = pack_params(blocks, fc)

    out = tcn_forward(x, params, num_classes)
    jax.block_until_ready(out)

    ref = reference_forward(x, blocks, fc)
    assert out.shape == (B, num_classes)
    # bf16 MXU operands (f32 accumulation) -> tolerance loosened vs the pure-f32 reference.
    assert jnp.allclose(out, ref, rtol=5e-2, atol=5e-2), (out, ref)
    print("KERNEL_OK")
</pallas_src>

<mosaic_0001>
module attributes {stable_mosaic.version = 11 : i64} {
  func.func @tcn_kernel(%arg0: i32, %arg1: memref<8x16x128xf32, #tpu.memory_space<vmem>>, %arg2: memref<128x128xbf16, #tpu.memory_space<vmem>>, %arg3: memref<1x128xf32, #tpu.memory_space<vmem>>, %arg4: memref<128x128xbf16, #tpu.memory_space<vmem>>, %arg5: memref<1x128xf32, #tpu.memory_space<vmem>>, %arg6: memref<384x128xbf16, #tpu.memory_space<vmem>>, %arg7: memref<1x128xf32, #tpu.memory_space<vmem>>, %arg8: memref<128x128xbf16, #tpu.memory_space<vmem>>, %arg9: memref<1x128xf32, #tpu.memory_space<vmem>>, %arg10: memref<384x128xbf16, #tpu.memory_space<vmem>>, %arg11: memref<1x128xf32, #tpu.memory_space<vmem>>, %arg12: memref<128x128xbf16, #tpu.memory_space<vmem>>, %arg13: memref<1x128xf32, #tpu.memory_space<vmem>>, %arg14: memref<128x128xbf16, #tpu.memory_space<vmem>>, %arg15: memref<1x128xf32, #tpu.memory_space<vmem>>, %arg16: memref<8x128xf32, #tpu.memory_space<vmem>>) attributes {dimension_semantics = [#tpu.dimension_semantics<parallel>], iteration_bounds = array<i64: 1>, scalar_prefetch = 0 : i64, scratch_operands = 0 : i64, tpu.core_type = #tpu.core_type<tc>, window_params = [{transform_indices = @transform_0, window_bounds = array<i64: 8, 16, 128>}, {pipeline_mode = #tpu.pipeline_mode<synchronous>, transform_indices = @transform_1, window_bounds = array<i64: 128, 128>}, {pipeline_mode = #tpu.pipeline_mode<synchronous>, transform_indices = @transform_2, window_bounds = array<i64: 1, 128>}, {pipeline_mode = #tpu.pipeline_mode<synchronous>, transform_indices = @transform_3, window_bounds = array<i64: 128, 128>}, {pipeline_mode = #tpu.pipeline_mode<synchronous>, transform_indices = @transform_4, window_bounds = array<i64: 1, 128>}, {pipeline_mode = #tpu.pipeline_mode<synchronous>, transform_indices = @transform_5, window_bounds = array<i64: 384, 128>}, {pipeline_mode = #tpu.pipeline_mode<synchronous>, transform_indices = @transform_6, window_bounds = array<i64: 1, 128>}, {pipeline_mode = #tpu.pipeline_mode<synchronous>, transform_indices = @transform_7, window_bounds = array<i64: 128, 128>}, {pipeline_mode = #tpu.pipeline_mode<synchronous>, transform_indices = @transform_8, window_bounds = array<i64: 1, 128>}, {pipeline_mode = #tpu.pipeline_mode<synchronous>, transform_indices = @transform_9, window_bounds = array<i64: 384, 128>}, {pipeline_mode = #tpu.pipeline_mode<synchronous>, transform_indices = @transform_10, window_bounds = array<i64: 1, 128>}, {pipeline_mode = #tpu.pipeline_mode<synchronous>, transform_indices = @transform_11, window_bounds = array<i64: 128, 128>}, {pipeline_mode = #tpu.pipeline_mode<synchronous>, transform_indices = @transform_12, window_bounds = array<i64: 1, 128>}, {pipeline_mode = #tpu.pipeline_mode<synchronous>, transform_indices = @transform_13, window_bounds = array<i64: 128, 128>}, {pipeline_mode = #tpu.pipeline_mode<synchronous>, transform_indices = @transform_14, window_bounds = array<i64: 1, 128>}, {transform_indices = @transform_15, window_bounds = array<i64: 8, 128>}]} {
    %c0 = arith.constant 0 : index
    %c0_0 = arith.constant 0 : index
    %c0_1 = arith.constant 0 : index
    %0 = vector.load %arg1[%c0, %c0_0, %c0_1] : memref<8x16x128xf32, #tpu.memory_space<vmem>>, vector<8x16x128xf32>
    %1 = vector.shape_cast %0 : vector<8x16x128xf32> to vector<128x128xf32>
    %2 = tpu.iota {dimensions = array<i32: 0>} : vector<128x1xi32>
    %c16_i32 = arith.constant 16 : i32
    %c0_i32 = arith.constant 0 : i32
    %3 = arith.cmpi eq, %c16_i32, %c0_i32 : i32
    %c1_i32 = arith.constant 1 : i32
    %4 = arith.select %3, %c1_i32, %c16_i32 : i32
    %5 = vector.broadcast %4 : i32 to vector<128x1xi32>
    %6 = arith.remsi %2, %5 : vector<128x1xi32>
    %c0_i32_2 = arith.constant 0 : i32
    %7 = vector.broadcast %c0_i32_2 : i32 to vector<128x1xi32>
    %8 = arith.cmpi ne, %6, %7 : vector<128x1xi32>
    %c0_i32_3 = arith.constant 0 : i32
    %9 = vector.broadcast %c0_i32_3 : i32 to vector<128x1xi32>
    %10 = arith.cmpi slt, %6, %9 : vector<128x1xi32>
    %c0_i32_4 = arith.constant 0 : i32
    %11 = arith.cmpi slt, %4, %c0_i32_4 : i32
    %12 = vector.broadcast %11 : i1 to vector<128x1xi1>
    %13 = vector.broadcast %12 : vector<128x1xi1> to vector<128x1xi1>
    %14 = arith.xori %10, %13 : vector<128x1xi1>
    %15 = arith.andi %14, %8 : vector<128x1xi1>
    %16 = vector.broadcast %4 : i32 to vector<128x1xi32>
    %17 = arith.addi %6, %16 : vector<128x1xi32>
    %18 = arith.select %15, %17, %6 : vector<128x1xi1>, vector<128x1xi32>
    %19 = arith.truncf %1 : vector<128x128xf32> to vector<128x128xbf16>
    %c0_5 = arith.constant 0 : index
    %c0_6 = arith.constant 0 : index
    %20 = vector.load %arg2[%c0_5, %c0_6] : memref<128x128xbf16, #tpu.memory_space<vmem>>, vector<128x128xbf16>
    %cst = arith.constant dense<0.000000e+00> : vector<128x128xf32>
    %21 = tpu.matmul %19, %20, %cst {dimension_numbers = #tpu.dot_dimension_numbers<[1], [0], [0], [1], [0, 0, 1, 1], [], []>} : vector<128x128xbf16>, vector<128x128xbf16>, vector<128x128xf32> -> vector<128x128xf32>
    %c0_7 = arith.constant 0 : index
    %c0_8 = arith.constant 0 : index
    %22 = vector.load %arg3[%c0_7, %c0_8] : memref<1x128xf32, #tpu.memory_space<vmem>>, vector<1x128xf32>
    %23 = vector.broadcast %22 : vector<1x128xf32> to vector<128x128xf32>
    %24 = arith.addf %21, %23 : vector<128x128xf32>
    %cst_9 = arith.constant 0.000000e+00 : f32
    %25 = vector.broadcast %cst_9 : f32 to vector<128x128xf32>
    %26 = arith.maximumf %24, %25 : vector<128x128xf32>
    %c0_10 = arith.constant 0 : index
    %c0_11 = arith.constant 0 : index
    %27 = vector.load %arg4[%c0_10, %c0_11] : memref<128x128xbf16, #tpu.memory_space<vmem>>, vector<128x128xbf16>
    %cst_12 = arith.constant dense<0.000000e+00> : vector<128x128xf32>
    %28 = tpu.matmul %19, %27, %cst_12 {dimension_numbers = #tpu.dot_dimension_numbers<[1], [0], [0], [1], [0, 0, 1, 1], [], []>} : vector<128x128xbf16>, vector<128x128xbf16>, vector<128x128xf32> -> vector<128x128xf32>
    %c0_13 = arith.constant 0 : index
    %c0_14 = arith.constant 0 : index
    %29 = vector.load %arg5[%c0_13, %c0_14] : memref<1x128xf32, #tpu.memory_space<vmem>>, vector<1x128xf32>
    %30 = vector.broadcast %29 : vector<1x128xf32> to vector<128x128xf32>
    %31 = arith.addf %28, %30 : vector<128x128xf32>
    %32 = arith.addf %26, %31 : vector<128x128xf32>
    %cst_15 = arith.constant 0.000000e+00 : f32
    %33 = vector.broadcast %cst_15 : f32 to vector<128x128xf32>
    %34 = arith.maximumf %32, %33 : vector<128x128xf32>
    %35 = arith.truncf %34 : vector<128x128xf32> to vector<128x128xbf16>
    %c256 = arith.constant 256 : index
    %c0_16 = arith.constant 0 : index
    %36 = vector.load %arg6[%c256, %c0_16] : memref<384x128xbf16, #tpu.memory_space<vmem>>, vector<128x128xbf16>
    %cst_17 = arith.constant dense<0.000000e+00> : vector<128x128xf32>
    %37 = tpu.matmul %35, %36, %cst_17 {dimension_numbers = #tpu.dot_dimension_numbers<[1], [0], [0], [1], [0, 0, 1, 1], [], []>} : vector<128x128xbf16>, vector<128x128xbf16>, vector<128x128xf32> -> vector<128x128xf32>
    %c4_i32 = arith.constant 4 : i32
    %38 = tpu.dynamic_rotate %34 by %c4_i32 dim 0 : vector<128x128xf32>, i32 -> vector<128x128xf32>
    %c4_i32_18 = arith.constant 4 : i32
    %39 = vector.broadcast %c4_i32_18 : i32 to vector<128x1xi32>
    %40 = arith.cmpi sge, %18, %39 : vector<128x1xi32>
    %cst_19 = arith.constant 0.000000e+00 : f32
    %41 = vector.shape_cast %40 : vector<128x1xi1> to vector<128x1xi1>
    %42 = vector.broadcast %41 : vector<128x1xi1> to vector<128x128xi1>
    %43 = vector.broadcast %cst_19 : f32 to vector<128x128xf32>
    %44 = arith.select %42, %38, %43 : vector<128x128xi1>, vector<128x128xf32>
    %45 = arith.truncf %44 : vector<128x128xf32> to vector<128x128xbf16>
    %c0_20 = arith.constant 0 : index
    %c0_21 = arith.constant 0 : index
    %46 = vector.load %arg6[%c0_20, %c0_21] : memref<384x128xbf16, #tpu.memory_space<vmem>>, vector<128x128xbf16>
    %cst_22 = arith.constant dense<0.000000e+00> : vector<128x128xf32>
    %47 = tpu.matmul %45, %46, %cst_22 {dimension_numbers = #tpu.dot_dimension_numbers<[1], [0], [0], [1], [0, 0, 1, 1], [], []>} : vector<128x128xbf16>, vector<128x128xbf16>, vector<128x128xf32> -> vector<128x128xf32>
    %48 = arith.addf %37, %47 : vector<128x128xf32>
    %c2_i32 = arith.constant 2 : i32
    %49 = tpu.dynamic_rotate %34 by %c2_i32 dim 0 : vector<128x128xf32>, i32 -> vector<128x128xf32>
    %c2_i32_23 = arith.constant 2 : i32
    %50 = vector.broadcast %c2_i32_23 : i32 to vector<128x1xi32>
    %51 = arith.cmpi sge, %18, %50 : vector<128x1xi32>
    %cst_24 = arith.constant 0.000000e+00 : f32
    %52 = vector.shape_cast %51 : vector<128x1xi1> to vector<128x1xi1>
    %53 = vector.broadcast %52 : vector<128x1xi1> to vector<128x128xi1>
    %54 = vector.broadcast %cst_24 : f32 to vector<128x128xf32>
    %55 = arith.select %53, %49, %54 : vector<128x128xi1>, vector<128x128xf32>
    %56 = arith.truncf %55 : vector<128x128xf32> to vector<128x128xbf16>
    %c128 = arith.constant 128 : index
    %c0_25 = arith.constant 0 : index
    %57 = vector.load %arg6[%c128, %c0_25] : memref<384x128xbf16, #tpu.memory_space<vmem>>, vector<128x128xbf16>
    %cst_26 = arith.constant dense<0.000000e+00> : vector<128x128xf32>
    %58 = tpu.matmul %56, %57, %cst_26 {dimension_numbers = #tpu.dot_dimension_numbers<[1], [0], [0], [1], [0, 0, 1, 1], [], []>} : vector<128x128xbf16>, vector<128x128xbf16>, vector<128x128xf32> -> vector<128x128xf32>
    %59 = arith.addf %48, %58 : vector<128x128xf32>
    %c0_27 = arith.constant 0 : index
    %c0_28 = arith.constant 0 : index
    %60 = vector.load %arg7[%c0_27, %c0_28] : memref<1x128xf32, #tpu.memory_space<vmem>>, vector<1x128xf32>
    %61 = vector.broadcast %60 : vector<1x128xf32> to vector<128x128xf32>
    %62 = arith.addf %59, %61 : vector<128x128xf32>
    %cst_29 = arith.constant 0.000000e+00 : f32
    %63 = vector.broadcast %cst_29 : f32 to vector<128x128xf32>
    %64 = arith.maximumf %62, %63 : vector<128x128xf32>
    %c0_30 = arith.constant 0 : index
    %c0_31 = arith.constant 0 : index
    %65 = vector.load %arg8[%c0_30, %c0_31] : memref<128x128xbf16, #tpu.memory_space<vmem>>, vector<128x128xbf16>
    %cst_32 = arith.constant dense<0.000000e+00> : vector<128x128xf32>
    %66 = tpu.matmul %35, %65, %cst_32 {dimension_numbers = #tpu.dot_dimension_numbers<[1], [0], [0], [1], [0, 0, 1, 1], [], []>} : vector<128x128xbf16>, vector<128x128xbf16>, vector<128x128xf32> -> vector<128x128xf32>
    %c0_33 = arith.constant 0 : index
    %c0_34 = arith.constant 0 : index
    %67 = vector.load %arg9[%c0_33, %c0_34] : memref<1x128xf32, #tpu.memory_space<vmem>>, vector<1x128xf32>
    %68 = vector.broadcast %67 : vector<1x128xf32> to vector<128x128xf32>
    %69 = arith.addf %66, %68 : vector<128x128xf32>
    %70 = arith.addf %64, %69 : vector<128x128xf32>
    %cst_35 = arith.constant 0.000000e+00 : f32
    %71 = vector.broadcast %cst_35 : f32 to vector<128x128xf32>
    %72 = arith.maximumf %70, %71 : vector<128x128xf32>
    %73 = arith.truncf %72 : vector<128x128xf32> to vector<128x128xbf16>
    %c256_36 = arith.constant 256 : index
    %c0_37 = arith.constant 0 : index
    %74 = vector.load %arg10[%c256_36, %c0_37] : memref<384x128xbf16, #tpu.memory_space<vmem>>, vector<128x128xbf16>
    %cst_38 = arith.constant dense<0.000000e+00> : vector<128x128xf32>
    %75 = tpu.matmul %73, %74, %cst_38 {dimension_numbers = #tpu.dot_dimension_numbers<[1], [0], [0], [1], [0, 0, 1, 1], [], []>} : vector<128x128xbf16>, vector<128x128xbf16>, vector<128x128xf32> -> vector<128x128xf32>
    %c8_i32 = arith.constant 8 : i32
    %76 = tpu.dynamic_rotate %72 by %c8_i32 dim 0 : vector<128x128xf32>, i32 -> vector<128x128xf32>
    %c8_i32_39 = arith.constant 8 : i32
    %77 = vector.broadcast %c8_i32_39 : i32 to vector<128x1xi32>
    %78 = arith.cmpi sge, %18, %77 : vector<128x1xi32>
    %cst_40 = arith.constant 0.000000e+00 : f32
    %79 = vector.shape_cast %78 : vector<128x1xi1> to vector<128x1xi1>
    %80 = vector.broadcast %79 : vector<128x1xi1> to vector<128x128xi1>
    %81 = vector.broadcast %cst_40 : f32 to vector<128x128xf32>
    %82 = arith.select %80, %76, %81 : vector<128x128xi1>, vector<128x128xf32>
    %83 = arith.truncf %82 : vector<128x128xf32> to vector<128x128xbf16>
    %c0_41 = arith.constant 0 : index
    %c0_42 = arith.constant 0 : index
    %84 = vector.load %arg10[%c0_41, %c0_42] : memref<384x128xbf16, #tpu.memory_space<vmem>>, vector<128x128xbf16>
    %cst_43 = arith.constant dense<0.000000e+00> : vector<128x128xf32>
    %85 = tpu.matmul %83, %84, %cst_43 {dimension_numbers = #tpu.dot_dimension_numbers<[1], [0], [0], [1], [0, 0, 1, 1], [], []>} : vector<128x128xbf16>, vector<128x128xbf16>, vector<128x128xf32> -> vector<128x128xf32>
    %86 = arith.addf %75, %85 : vector<128x128xf32>
    %c4_i32_44 = arith.constant 4 : i32
    %87 = tpu.dynamic_rotate %72 by %c4_i32_44 dim 0 : vector<128x128xf32>, i32 -> vector<128x128xf32>
    %c4_i32_45 = arith.constant 4 : i32
    %88 = vector.broadcast %c4_i32_45 : i32 to vector<128x1xi32>
    %89 = arith.cmpi sge, %18, %88 : vector<128x1xi32>
    %cst_46 = arith.constant 0.000000e+00 : f32
    %90 = vector.shape_cast %89 : vector<128x1xi1> to vector<128x1xi1>
    %91 = vector.broadcast %90 : vector<128x1xi1> to vector<128x128xi1>
    %92 = vector.broadcast %cst_46 : f32 to vector<128x128xf32>
    %93 = arith.select %91, %87, %92 : vector<128x128xi1>, vector<128x128xf32>
    %94 = arith.truncf %93 : vector<128x128xf32> to vector<128x128xbf16>
    %c128_47 = arith.constant 128 : index
    %c0_48 = arith.constant 0 : index
    %95 = vector.load %arg10[%c128_47, %c0_48] : memref<384x128xbf16, #tpu.memory_space<vmem>>, vector<128x128xbf16>
    %cst_49 = arith.constant dense<0.000000e+00> : vector<128x128xf32>
    %96 = tpu.matmul %94, %95, %cst_49 {dimension_numbers = #tpu.dot_dimension_numbers<[1], [0], [0], [1], [0, 0, 1, 1], [], []>} : vector<128x128xbf16>, vector<128x128xbf16>, vector<128x128xf32> -> vector<128x128xf32>
    %97 = arith.addf %86, %96 : vector<128x128xf32>
    %c0_50 = arith.constant 0 : index
    %c0_51 = arith.constant 0 : index
    %98 = vector.load %arg11[%c0_50, %c0_51] : memref<1x128xf32, #tpu.memory_space<vmem>>, vector<1x128xf32>
    %99 = vector.broadcast %98 : vector<1x128xf32> to vector<128x128xf32>
    %100 = arith.addf %97, %99 : vector<128x128xf32>
    %cst_52 = arith.constant 0.000000e+00 : f32
    %101 = vector.broadcast %cst_52 : f32 to vector<128x128xf32>
    %102 = arith.maximumf %100, %101 : vector<128x128xf32>
    %c0_53 = arith.constant 0 : index
    %c0_54 = arith.constant 0 : index
    %103 = vector.load %arg12[%c0_53, %c0_54] : memref<128x128xbf16, #tpu.memory_space<vmem>>, vector<128x128xbf16>
    %cst_55 = arith.constant dense<0.000000e+00> : vector<128x128xf32>
    %104 = tpu.matmul %73, %103, %cst_55 {dimension_numbers = #tpu.dot_dimension_numbers<[1], [0], [0], [1], [0, 0, 1, 1], [], []>} : vector<128x128xbf16>, vector<128x128xbf16>, vector<128x128xf32> -> vector<128x128xf32>
    %c0_56 = arith.constant 0 : index
    %c0_57 = arith.constant 0 : index
    %105 = vector.load %arg13[%c0_56, %c0_57] : memref<1x128xf32, #tpu.memory_space<vmem>>, vector<1x128xf32>
    %106 = vector.broadcast %105 : vector<1x128xf32> to vector<128x128xf32>
    %107 = arith.addf %104, %106 : vector<128x128xf32>
    %108 = arith.addf %102, %107 : vector<128x128xf32>
    %cst_58 = arith.constant 0.000000e+00 : f32
    %109 = vector.broadcast %cst_58 : f32 to vector<128x128xf32>
    %110 = arith.maximumf %108, %109 : vector<128x128xf32>
    %111 = vector.shape_cast %110 : vector<128x128xf32> to vector<8x16x128xf32>
    %cst_59 = arith.constant dense<0.000000e+00> : vector<8x128xf32>
    %112 = vector.multi_reduction <add>, %111, %cst_59 [1] : vector<8x16x128xf32> to vector<8x128xf32>
    %113 = arith.truncf %112 : vector<8x128xf32> to vector<8x128xbf16>
    %c0_60 = arith.constant 0 : index
    %c0_61 = arith.constant 0 : index
    %114 = vector.load %arg14[%c0_60, %c0_61] : memref<128x128xbf16, #tpu.memory_space<vmem>>, vector<128x128xbf16>
    %cst_62 = arith.constant dense<0.000000e+00> : vector<8x128xf32>
    %115 = tpu.matmul %113, %114, %cst_62 {dimension_numbers = #tpu.dot_dimension_numbers<[1], [0], [0], [1], [0, 0, 1, 1], [], []>} : vector<8x128xbf16>, vector<128x128xbf16>, vector<8x128xf32> -> vector<8x128xf32>
    %c0_63 = arith.constant 0 : index
    %c0_64 = arith.constant 0 : index
    %116 = vector.load %arg15[%c0_63, %c0_64] : memref<1x128xf32, #tpu.memory_space<vmem>>, vector<1x128xf32>
    %117 = vector.broadcast %116 : vector<1x128xf32> to vector<8x128xf32>
    %118 = arith.addf %115, %117 : vector<8x128xf32>
    %c0_65 = arith.constant 0 : index
    %c0_66 = arith.constant 0 : index
    %119 = vector.load %arg16[%c0_65, %c0_66] : memref<8x128xf32, #tpu.memory_space<vmem>>, vector<8x128xf32>
    tpu.vector_store %arg16[%c0_65, %c0_66], %118 {strides = array<i32>} : memref<8x128xf32, #tpu.memory_space<vmem>>, vector<8x128xf32>,
    return
  }
  func.func @transform_0(%arg0: i32) -> (i32, i32, i32) {
    %c0_i32 = arith.constant 0 : i32
    %c0_i32_0 = arith.constant 0 : i32
    %c0_i32_1 = arith.constant 0 : i32
    return %arg0, %c0_i32, %c0_i32_0 : i32, i32, i32
  }
  func.func @transform_1(%arg0: i32) -> (i32, i32) {
    %c0_i32 = arith.constant 0 : i32
    %c0_i32_0 = arith.constant 0 : i32
    %c0_i32_1 = arith.constant 0 : i32
    return %c0_i32, %c0_i32_0 : i32, i32
  }
  func.func @transform_2(%arg0: i32) -> (i32, i32) {
    %c0_i32 = arith.constant 0 : i32
    %c0_i32_0 = arith.constant 0 : i32
    %c0_i32_1 = arith.constant 0 : i32
    return %c0_i32, %c0_i32_0 : i32, i32
  }
  func.func @transform_3(%arg0: i32) -> (i32, i32) {
    %c0_i32 = arith.constant 0 : i32
    %c0_i32_0 = arith.constant 0 : i32
    %c0_i32_1 = arith.constant 0 : i32
    return %c0_i32, %c0_i32_0 : i32, i32
  }
  func.func @transform_4(%arg0: i32) -> (i32, i32) {
    %c0_i32 = arith.constant 0 : i32
    %c0_i32_0 = arith.constant 0 : i32
    %c0_i32_1 = arith.constant 0 : i32
    return %c0_i32, %c0_i32_0 : i32, i32
  }
  func.func @transform_5(%arg0: i32) -> (i32, i32) {
    %c0_i32 = arith.constant 0 : i32
    %c0_i32_0 = arith.constant 0 : i32
    %c0_i32_1 = arith.constant 0 : i32
    return %c0_i32, %c0_i32_0 : i32, i32
  }
  func.func @transform_6(%arg0: i32) -> (i32, i32) {
    %c0_i32 = arith.constant 0 : i32
    %c0_i32_0 = arith.constant 0 : i32
    %c0_i32_1 = arith.constant 0 : i32
    return %c0_i32, %c0_i32_0 : i32, i32
  }
  func.func @transform_7(%arg0: i32) -> (i32, i32) {
    %c0_i32 = arith.constant 0 : i32
    %c0_i32_0 = arith.constant 0 : i32
    %c0_i32_1 = arith.constant 0 : i32
    return %c0_i32, %c0_i32_0 : i32, i32
  }
  func.func @transform_8(%arg0: i32) -> (i32, i32) {
    %c0_i32 = arith.constant 0 : i32
    %c0_i32_0 = arith.constant 0 : i32
    %c0_i32_1 = arith.constant 0 : i32
    return %c0_i32, %c0_i32_0 : i32, i32
  }
  func.func @transform_9(%arg0: i32) -> (i32, i32) {
    %c0_i32 = arith.constant 0 : i32
    %c0_i32_0 = arith.constant 0 : i32
    %c0_i32_1 = arith.constant 0 : i32
    return %c0_i32, %c0_i32_0 : i32, i32
  }
  func.func @transform_10(%arg0: i32) -> (i32, i32) {
    %c0_i32 = arith.constant 0 : i32
    %c0_i32_0 = arith.constant 0 : i32
    %c0_i32_1 = arith.constant 0 : i32
    return %c0_i32, %c0_i32_0 : i32, i32
  }
  func.func @transform_11(%arg0: i32) -> (i32, i32) {
    %c0_i32 = arith.constant 0 : i32
    %c0_i32_0 = arith.constant 0 : i32
    %c0_i32_1 = arith.constant 0 : i32
    return %c0_i32, %c0_i32_0 : i32, i32
  }
  func.func @transform_12(%arg0: i32) -> (i32, i32) {
    %c0_i32 = arith.constant 0 : i32
    %c0_i32_0 = arith.constant 0 : i32
    %c0_i32_1 = arith.constant 0 : i32
    return %c0_i32, %c0_i32_0 : i32, i32
  }
  func.func @transform_13(%arg0: i32) -> (i32, i32) {
    %c0_i32 = arith.constant 0 : i32
    %c0_i32_0 = arith.constant 0 : i32
    %c0_i32_1 = arith.constant 0 : i32
    return %c0_i32, %c0_i32_0 : i32, i32
  }
  func.func @transform_14(%arg0: i32) -> (i32, i32) {
    %c0_i32 = arith.constant 0 : i32
    %c0_i32_0 = arith.constant 0 : i32
    %c0_i32_1 = arith.constant 0 : i32
    return %c0_i32, %c0_i32_0 : i32, i32
  }
  func.func @transform_15(%arg0: i32) -> (i32, i32) {
    %c0_i32 = arith.constant 0 : i32
    %c0_i32_0 = arith.constant 0 : i32
    return %arg0, %c0_i32 : i32, i32
  }
}

</mosaic_0001>

<bundles_post_ra>
// kernel: tpu_custom_call.1
= control target key start
LH: loop header
LB: loop body
LE: loop exit
PB: predicated region body
PF: predicated region fallthrough
CT: control target
= control target key end

     0   :  { %s4942_s0 = inlined_call_operand.hbm [shape: f32[8,16,128], index: 0, kind: input, shape index: {}]   ;;  %s4943_s1 = inlined_call_operand.hbm [shape: bf16[128,128], index: 1, kind: input, shape index: {}]   ;;  %s4944_s2 = inlined_call_operand.vmem [shape: f32[1,128], index: 2, kind: input, shape index: {}]   ;;  %s4945_s3 = inlined_call_operand.hbm [shape: bf16[128,128], index: 3, kind: input, shape index: {}]   ;;  %s4946_s4 = inlined_call_operand.vmem [shape: f32[1,128], index: 4, kind: input, shape index: {}]   ;;  %s4947_s5 = inlined_call_operand.hbm [shape: bf16[384,128], index: 5, kind: input, shape index: {}]   ;;  %s4948_s6 = inlined_call_operand.vmem [shape: f32[1,128], index: 6, kind: input, shape index: {}]   ;;  %s4949_s7 = inlined_call_operand.hbm [shape: bf16[128,128], index: 7, kind: input, shape index: {}]   ;;  %s4950_s8 = inlined_call_operand.vmem [shape: f32[1,128], index: 8, kind: input, shape index: {}]   ;;  %s4951_s9 = inlined_call_operand.hbm [shape: bf16[384,128], index: 9, kind: input, shape index: {}]   ;;  %s4952_s10 = inlined_call_operand.vmem [shape: f32[1,128], index: 10, kind: input, shape index: {}]   ;;  %s4953_s11 = inlined_call_operand.hbm [shape: bf16[128,128], index: 11, kind: input, shape index: {}]   ;;  %s4954_s12 = inlined_call_operand.vmem [shape: f32[1,128], index: 12, kind: input, shape index: {}]   ;;  %s4955_s13 = inlined_call_operand.hbm [shape: bf16[128,128], index: 13, kind: input, shape index: {}]   ;;  %s4956_s14 = inlined_call_operand.vmem [shape: f32[1,128], index: 14, kind: input, shape index: {}]   ;;  %s4957_s15 = inlined_call_operand.hbm [shape: f32[8,128], index: 15, kind: output, shape index: {}]  }
   0x1   :  { %4964 = sst [smem:[#allocation23_spill]] %s4957_s15 }
   0x2   :  { %20 = vsyncpa [#allocation3], 0 }
   0x3   :  { %21 = vsyncpa [#allocation6], 0 }
   0x4   :  { %22 = vsyncpa [#allocation9], 0 }
   0x5   :  { %23 = vsyncpa [#allocation12], 0 }
   0x6   :  { %24 = vsyncpa [#allocation15], 0 }
   0x7   :  { %25 = vsyncpa [#allocation4], 0  ;;  %s3889_s18 = smov [#allocation5]   ;;  %s3679_s22 = scalar_lea.hbm %s4943_s1, 1024 }
   0x8   :  { %s43_s19 = sshll.u32 %s3889_s18, 4  ;;  %p3680_p0 = scmp.ne.s32.totalorder %s4943_s1, %s3679_s22  ;;  %s44_s19 = int_to_ptr.vmem [resolvable:$true] %s43_s19 }
   0x9   :  { %p3683_p1 = scmp.lt.u32.totalorder %s3679_s22, %s4943_s1 }
   0xb   :  { %p3685_p2 = pnand %p3683_p1, %p3680_p0 }
   0xd   :  { %3688 = shalt.err (!%p3685_p2)
}
   0xe   :  { %s3689_s27 = scalar_lea.vmem %s44_s19, 1024  ;;  %p3694_p4 = scmp.lt.s32.totalorder %s44_s19, %s44_s19 }
   0xf   :  { %p3690_p3 = scmp.ne.s32.totalorder %s44_s19, %s3689_s27  ;;  %p3695_p5 = scmp.lt.s32.totalorder %s3689_s27, %s3689_s27 }
  0x11   :  { %p3696_p6 = por %p3695_p5, %p3694_p4 }
  0x13   :  { %p3697_p7 = pnand %p3696_p6, %p3690_p3 }
  0x15   :  { %3700 = shalt.err (!%p3697_p7)
}
  0x16   :  { %s3890_s28 = smov 64   ;;  %s3891_s29 = smov 4  }
  0x17   :  { %49 = dma.hbm_to_vmem [thread:$0]  %s4943_s1, 1024, %s44_s19, [#allocation6], %s3890_s28, %s3890_s28, %s3891_s29  }
  0x18   :  { %s3892_s17 = smov [#allocation8]   ;;  %s3893_s20 = smov [#allocation11]  }
  0x19   :  { %s71_s18 = sshll.u32 %s3892_s17, 4  ;;  %s99_s21 = sshll.u32 %s3893_s20, 4  ;;  %s72_s18 = int_to_ptr.vmem [resolvable:$true] %s71_s18  ;;  %s100_s21 = int_to_ptr.vmem [resolvable:$true] %s99_s21 }
  0x1a   :  { %s3701_s24 = scalar_lea.hbm %s4947_s5, 3072 }
  0x1b   :  { %p3702_p8 = scmp.ne.s32.totalorder %s4947_s5, %s3701_s24  ;;  %p3705_p9 = scmp.lt.u32.totalorder %s3701_s24, %s4947_s5 }
  0x1d   :  { %p3707_p10 = pnand %p3705_p9, %p3702_p8 }
  0x1f   :  { %3710 = shalt.err (!%p3707_p10)
}
  0x20   :  { %s3711_s1 = scalar_lea.vmem %s72_s18, 3072  ;;  %p3716_p12 = scmp.lt.s32.totalorder %s72_s18, %s72_s18 }
  0x21   :  { %p3712_p11 = scmp.ne.s32.totalorder %s72_s18, %s3711_s1  ;;  %p3717_p13 = scmp.lt.s32.totalorder %s3711_s1, %s3711_s1 }
  0x23   :  { %p3718_p0 = por %p3717_p13, %p3716_p12 }
  0x25   :  { %p3719_p1 = pnand %p3718_p0, %p3712_p11 }
  0x27   :  { %3722 = shalt.err (!%p3719_p1)
}
  0x28   :  { %77 = dma.hbm_to_vmem [thread:$0]  %s4947_s5, 3072, %s72_s18, [#allocation9], %s3890_s28, %s3890_s28, %s3891_s29  }
  0x29   :  { %s3723_s17 = scalar_lea.hbm %s4951_s9, 3072 }
  0x2a   :  { %p3724_p2 = scmp.ne.s32.totalorder %s4951_s9, %s3723_s17  ;;  %p3727_p3 = scmp.lt.u32.totalorder %s3723_s17, %s4951_s9 }
  0x2c   :  { %p3729_p4 = pnand %p3727_p3, %p3724_p2 }
  0x2e   :  { %3732 = shalt.err (!%p3729_p4)
}
  0x2f   :  { %s3733_s25 = scalar_lea.vmem %s100_s21, 3072  ;;  %p3738_p6 = scmp.lt.s32.totalorder %s100_s21, %s100_s21 }
  0x30   :  { %p3734_p5 = scmp.ne.s32.totalorder %s100_s21, %s3733_s25  ;;  %p3739_p7 = scmp.lt.s32.totalorder %s3733_s25, %s3733_s25 }
  0x32   :  { %p3740_p8 = por %p3739_p7, %p3738_p6 }
  0x34   :  { %p3741_p9 = pnand %p3740_p8, %p3734_p5 }
  0x36   :  { %3744 = shalt.err (!%p3741_p9)
}
  0x37   :  { %105 = dma.hbm_to_vmem [thread:$0]  %s4951_s9, 3072, %s100_s21, [#allocation12], %s3890_s28, %s3890_s28, %s3891_s29  }
  0x38   :  { %s3894_s26 = smov [#allocation2]   ;;  %s3745_s30 = scalar_lea.hbm %s4942_s0, 2048 }
  0x39   :  { %s31_s27 = sshll.u32 %s3894_s26, 4  ;;  %p3746_p10 = scmp.ne.s32.totalorder %s4942_s0, %s3745_s30  ;;  %s32_s27 = int_to_ptr.vmem [resolvable:$true] %s31_s27 }
  0x3a   :  { %p3749_p11 = scmp.lt.u32.totalorder %s3745_s30, %s4942_s0 }
  0x3c   :  { %p3751_p12 = pnand %p3749_p11, %p3746_p10 }
  0x3e   :  { %3754 = shalt.err (!%p3751_p12)
}
  0x3f   :  { %s3755_s22 = scalar_lea.vmem %s32_s27, 2048  ;;  %p3760_p0 = scmp.lt.s32.totalorder %s32_s27, %s32_s27 }
  0x40   :  { %p3756_p13 = scmp.ne.s32.totalorder %s32_s27, %s3755_s22  ;;  %p3761_p1 = scmp.lt.s32.totalorder %s3755_s22, %s3755_s22 }
  0x42   :  { %p3762_p2 = por %p3761_p1, %p3760_p0 }
  0x44   :  { %p3763_p3 = pnand %p3762_p2, %p3756_p13 }
  0x46   :  { %3766 = shalt.err (!%p3763_p3)
}
  0x47   :  { %s3895_s9 = smov 128   ;;  %s3896_s21 = smov 8  }
  0x48   :  { %37 = dma.hbm_to_vmem [thread:$0]  %s4942_s0, 2048, %s32_s27, [#allocation3], %s3895_s9, %s3895_s9, %s3896_s21  }
  0x49   :  { %s3897_s25 = smov [#allocation7]   ;;  %s3898_s18 = smov [#allocation10]  }
  0x4a   :  { %s57_s5 = sshll.u32 %s3897_s25, 4  ;;  %s85_s26 = sshll.u32 %s3898_s18, 4  ;;  %s58_s5 = int_to_ptr.vmem [resolvable:$true] %s57_s5  ;;  %s4042_s26 = int_to_ptr.vmem [resolvable:$true] %s85_s26 }
  0x4b   :  { %s3767_s30 = scalar_lea.hbm %s4945_s3, 1024 }
  0x4c   :  { %p3768_p4 = scmp.ne.s32.totalorder %s4945_s3, %s3767_s30  ;;  %p3771_p5 = scmp.lt.u32.totalorder %s3767_s30, %s4945_s3 }
  0x4e   :  { %p3773_p6 = pnand %p3771_p5, %p3768_p4 }
  0x50   :  { %3776 = shalt.err (!%p3773_p6)
}
  0x51   :  { %s3777_s0 = scalar_lea.vmem %s58_s5, 1024  ;;  %p3782_p8 = scmp.lt.s32.totalorder %s58_s5, %s58_s5 }
  0x52   :  { %p3778_p7 = scmp.ne.s32.totalorder %s58_s5, %s3777_s0  ;;  %p3783_p9 = scmp.lt.s32.totalorder %s3777_s0, %s3777_s0 }
  0x54   :  { %p3784_p10 = por %p3783_p9, %p3782_p8 }
  0x56   :  { %p3785_p11 = pnand %p3784_p10, %p3778_p7 }
  0x58   :  { %3788 = shalt.err (!%p3785_p11)
}
  0x59   :  { %63 = dma.hbm_to_vmem [thread:$0]  %s4945_s3, 1024, %s58_s5, [#allocation6], %s3890_s28, %s3890_s28, %s3891_s29  }
  0x5a   :  { %s3789_s23 = scalar_lea.hbm %s4949_s7, 1024 }
  0x5b   :  { %p3790_p12 = scmp.ne.s32.totalorder %s4949_s7, %s3789_s23  ;;  %p3793_p13 = scmp.lt.u32.totalorder %s3789_s23, %s4949_s7 }
  0x5d   :  { %p3795_p0 = pnand %p3793_p13, %p3790_p12 }
  0x5f   :  { %3798 = shalt.err (!%p3795_p0)
}
  0x60   :  { %s3799_s19 = scalar_lea.vmem %s4042_s26, 1024  ;;  %p3804_p2 = scmp.lt.s32.totalorder %s4042_s26, %s4042_s26 }
  0x61   :  { %p3800_p1 = scmp.ne.s32.totalorder %s4042_s26, %s3799_s19  ;;  %p3805_p3 = scmp.lt.s32.totalorder %s3799_s19, %s3799_s19 }
  0x63   :  { %p3806_p4 = por %p3805_p3, %p3804_p2 }
  0x65   :  { %p3807_p5 = pnand %p3806_p4, %p3800_p1 }
  0x67   :  { %3810 = shalt.err (!%p3807_p5)
}
  0x68   :  { %91 = dma.hbm_to_vmem [thread:$0]  %s4949_s7, 1024, %s4042_s26, [#allocation9], %s3890_s28, %s3890_s28, %s3891_s29  }
  0x69   :  { %s3899_s30 = smov [#allocation13]   ;;  %s3900_s15 = smov [#allocation14]  }
  0x6a   :  { %s113_s16 = sshll.u32 %s3899_s30, 4  ;;  %s127_s17 = sshll.u32 %s3900_s15, 4  ;;  %s114_s16 = int_to_ptr.vmem [resolvable:$true] %s113_s16  ;;  %s4079_s17 = int_to_ptr.vmem [resolvable:$true] %s127_s17 }
  0x6b   :  { %s3811_s27 = scalar_lea.hbm %s4953_s11, 1024 }
  0x6c   :  { %p3812_p6 = scmp.ne.s32.totalorder %s4953_s11, %s3811_s27  ;;  %p3815_p7 = scmp.lt.u32.totalorder %s3811_s27, %s4953_s11 }
  0x6e   :  { %p3817_p8 = pnand %p3815_p7, %p3812_p6 }
  0x70   :  { %3820 = shalt.err (!%p3817_p8)
}
  0x71   :  { %s3821_s7 = scalar_lea.vmem %s114_s16, 1024  ;;  %p3826_p10 = scmp.lt.s32.totalorder %s114_s16, %s114_s16 }
  0x72   :  { %p3822_p9 = scmp.ne.s32.totalorder %s114_s16, %s3821_s7  ;;  %p3827_p11 = scmp.lt.s32.totalorder %s3821_s7, %s3821_s7 }
  0x74   :  { %p3828_p12 = por %p3827_p11, %p3826_p10 }
  0x76   :  { %p3829_p13 = pnand %p3828_p12, %p3822_p9 }
  0x78   :  { %3832 = shalt.err (!%p3829_p13)
}
  0x79   :  { %119 = dma.hbm_to_vmem [thread:$0]  %s4953_s11, 1024, %s114_s16, [#allocation12], %s3890_s28, %s3890_s28, %s3891_s29  }
  0x7a   :  { %s3833_s1 = scalar_lea.hbm %s4955_s13, 1024 }
  0x7b   :  { %p3834_p0 = scmp.ne.s32.totalorder %s4955_s13, %s3833_s1  ;;  %p3837_p1 = scmp.lt.u32.totalorder %s3833_s1, %s4955_s13 }
  0x7d   :  { %p3839_p2 = pnand %p3837_p1, %p3834_p0 }
  0x7f   :  { %3842 = shalt.err (!%p3839_p2)
}
  0x80   :  { %s3843_s15 = scalar_lea.vmem %s4079_s17, 1024  ;;  %p3848_p4 = scmp.lt.s32.totalorder %s4079_s17, %s4079_s17 }
  0x81   :  { %p3844_p3 = scmp.ne.s32.totalorder %s4079_s17, %s3843_s15  ;;  %p3849_p5 = scmp.lt.s32.totalorder %s3843_s15, %s3843_s15 }
  0x83   :  { %p3850_p6 = por %p3849_p5, %p3848_p4 }
  0x85   :  { %p3851_p7 = pnand %p3850_p6, %p3844_p3 }
  0x87   :  { %3854 = shalt.err (!%p3851_p7)
}
  0x88   :  { %133 = dma.hbm_to_vmem [thread:$0]  %s4955_s13, 1024, %s4079_s17, [#allocation15], %s3890_s28, %s3890_s28, %s3891_s29  }
  0x89   :  { %3877 = dma.done.wait [#allocation3], 2048  }
  0x8a   :  { %3878 = vsyncadd [#allocation3], 4294965248 }
  0x8b   :  { %3879 = dma.done.wait [#allocation6], 2048  }
  0x8c   :  { %3880 = vsyncadd [#allocation6], 4294965248 }
  0x8d   :  { %3881 = dma.done.wait [#allocation9], 4096  }
  0x8e   :  { %3882 = vsyncadd [#allocation9], 4294963200 }
  0x8f   :  { %3883 = dma.done.wait [#allocation12], 4096  }
  0x90   :  { %3884 = vsyncadd [#allocation12], 4294963200 }
  0x91   :  { %3885 = dma.done.wait [#allocation15], 1024  }
  0x92   :  { %3886 = vsyncadd [#allocation15], 4294966272  ;;  %v3591_v0 = vld [vmem:[#allocation5] sm:$0xff]   ;;  %v3593_v2 = vld [vmem:[#allocation5 + $0x8] sm:$0xff]   ;;  %v177_v57 = vlaneseq  ;;  %vm3901_vm7 = vmmov 1   ;;  %s3904_s9 = smov [#allocation16]  }
  0x93   :  { %v3592_v1 = vld [vmem:[#allocation7] sm:$0xff]   ;;  %3171 = vmatprep.subr.bf16.mxu0 %v3591_v0  ;;  %v3594_v3 = vld [vmem:[#allocation7 + $0x8] sm:$0xff]   ;;  %v3595_v4 = vld [vmem:[#allocation5 + $0x10] sm:$0xff]   ;;  %s2822_s21 = sshll.u32 %s3904_s9, 4  ;;  %s2823_s21 = int_to_ptr.vmem [resolvable:$true] %s2822_s21 }
  0x94   :  { %3203 = vmatprep.subr.bf16.mxu1 %v3592_v1  ;;  %3172 = vmatpush3.bf16.msra.mxu0 %v3591_v0  ;;  %v3596_v5 = vld [vmem:[#allocation7 + $0x10] sm:$0xff]   ;;  %v3597_v6 = vld [vmem:[#allocation5 + $0x18] sm:$0xff]   ;;  %v3599_v8 = vld [vmem:[#allocation5 + $0x20] sm:$0xff]   ;;  %v4124_v59 = vshrl.u32 %v177_v57, 7  ;;  %s3855_s23 = scalar_lea.vmem %s2823_s21, 128  ;;  %p3860_p9 = scmp.lt.s32.totalorder %s2823_s21, %s2823_s21 }
  0x95   :  { %3204 = vmatpush3.bf16.msra.mxu1 %v3592_v1  ;;  %3173 = vmatprep.subr.bf16.mxu0 %v3593_v2  ;;  %v3598_v7 = vld [vmem:[#allocation7 + $0x18] sm:$0xff]   ;;  %v3600_v9 = vld [vmem:[#allocation7 + $0x20] sm:$0xff]   ;;  %v3601_v10 = vld [vmem:[#allocation5 + $0x28] sm:$0xff]   ;;  %p3856_p8 = scmp.ne.s32.totalorder %s2823_s21, %s3855_s23  ;;  %p3861_p10 = scmp.lt.s32.totalorder %s3855_s23, %s3855_s23 }
  0x96   :  { %3205 = vmatprep.subr.bf16.mxu1 %v3594_v3  ;;  %v161_v11 = vld [vmem:[#allocation2] sm:$0xff]  ;;  %v162_v12 = vld [vmem:[#allocation2 + $0x8] sm:$0xff]  ;;  %v3603_v15 = vld [vmem:[#allocation5 + $0x30] sm:$0xff]   ;;  %vm4963_vm0 = vcmp.lt.s32.totalorder %v4124_v59, 4  ;;  %vm1229_vm1 = vcmp.lt.s32.totalorder %v4124_v59, 2 }
  0x97   :  { %v3602_v13 = vld [vmem:[#allocation7 + $0x28] sm:$0xff]   ;;  %v386_v14 = vpack.c.bf16 %v162_v12, %v161_v11  ;;  %v3604_v16 = vld [vmem:[#allocation7 + $0x30] sm:$0xff]   ;;  %v3605_v17 = vld [vmem:[#allocation5 + $0x38] sm:$0xff]   ;;  %v4141_v11 = vadd.s32 32, %v4124_v59  ;;  %p3862_p11 = por %p3861_p10, %p3860_p9 }
  0x98   :  { %3174 = vmatpush3.bf16.msra.mxu0 %v3593_v2  ;;  %v3606_v18 = vld [vmem:[#allocation7 + $0x38] sm:$0xff]   ;;  %v163_v19 = vld [vmem:[#allocation2 + $0x10] sm:$0xff]  ;;  %v165_v21 = vld [vmem:[#allocation2 + $0x20] sm:$0xff] }
  0x99   :  { %3206 = vmatpush3.bf16.msra.mxu1 %v3594_v3  ;;  %3175 = vmatprep.subr.bf16.mxu0 %v3595_v4  ;;  %v164_v20 = vld [vmem:[#allocation2 + $0x18] sm:$0xff]  ;;  %v166_v22 = vld [vmem:[#allocation2 + $0x28] sm:$0xff]  ;;  %v3607_v23 = vld [vmem:[#allocation10] sm:$0xff]   ;;  %p3863_p12 = pnand %p3862_p11, %p3856_p8 }
  0x9a   :  { %3207 = vmatprep.subr.bf16.mxu1 %v3596_v5  ;;  %3187 = vmatprep.mubr.bf16.mxu0 %v386_v14  ;;  %v387_v24 = vpack.c.bf16 %v164_v20, %v163_v19  ;;  %v388_v25 = vpack.c.bf16 %v166_v22, %v165_v21  ;;  %v3608_v26 = vld [vmem:[#allocation10 + $0x8] sm:$0xff]   ;;  %v167_v27 = vld [vmem:[#allocation2 + $0x30] sm:$0xff]  ;;  %v168_v28 = vld [vmem:[#allocation2 + $0x38] sm:$0xff] }
  0x9b   :  { %3219 = vmatprep.mubr.bf16.mxu1 %v386_v14  ;;  %v169_v29 = vld [vmem:[#allocation2 + $0x40] sm:$0xff]  ;;  %v170_v30 = vld [vmem:[#allocation2 + $0x48] sm:$0xff]  ;;  %v3609_v31 = vld [vmem:[#allocation10 + $0x10] sm:$0xff]   ;;  %v389_v32 = vpack.c.bf16 %v168_v28, %v167_v27  ;;  %v4962_v27 = vand.u32 15, %v4141_v11 }
  0x9c   :  { %3176 = vmatpush3.bf16.msra.mxu0 %v3595_v4  ;;  %v390_v33 = vpack.c.bf16 %v170_v30, %v169_v29  ;;  %v3610_v34 = vld [vmem:[#allocation10 + $0x18] sm:$0xff]   ;;  %v171_v35 = vld [vmem:[#allocation2 + $0x50] sm:$0xff]  ;;  %v173_v37 = vld [vmem:[#allocation2 + $0x60] sm:$0xff] }
  0x9d   :  { %3208 = vmatpush3.bf16.msra.mxu1 %v3596_v5  ;;  %3177 = vmatprep.subr.bf16.mxu0 %v3597_v6  ;;  %v172_v36 = vld [vmem:[#allocation2 + $0x58] sm:$0xff]  ;;  %v174_v38 = vld [vmem:[#allocation2 + $0x68] sm:$0xff]  ;;  %v3611_v39 = vld [vmem:[#allocation10 + $0x20] sm:$0xff]   ;;  %v4136_v5 = vadd.s32 16, %v4124_v59  ;;  %vm4290_vm4 = vcmp.ge.s32.totalorder %v4962_v27, 4 }
  0x9e   :  { %3209 = vmatprep.subr.bf16.mxu1 %v3598_v7  ;;  %v391_v40 = vpack.c.bf16 %v172_v36, %v171_v35  ;;  %v392_v41 = vpack.c.bf16 %v174_v38, %v173_v37  ;;  %v175_v42 = vld [vmem:[#allocation2 + $0x70] sm:$0xff]  ;;  %v176_v43 = vld [vmem:[#allocation2 + $0x78] sm:$0xff]  ;;  %v3612_v45 = vld [vmem:[#allocation10 + $0x28] sm:$0xff]   ;;  %v4164_v38 = vadd.s32 80, %v4124_v59 }
  0x9f   :  { %v393_v44 = vpack.c.bf16 %v176_v43, %v175_v42  ;;  %v3613_v46 = vld [vmem:[#allocation10 + $0x30] sm:$0xff]   ;;  %v3614_v47 = vld [vmem:[#allocation8] sm:$0xff]   ;;  %v3615_v48 = vld [vmem:[#allocation10 + $0x38] sm:$0xff]  }
  0xa0   :  { %3178 = vmatpush3.bf16.msra.mxu0 %v3597_v6  ;;  %v3616_v49 = vld [vmem:[#allocation8 + $0x8] sm:$0xff]   ;;  %v3617_v50 = vld [vmem:[#allocation8 + $0x10] sm:$0xff]   ;;  %v3618_v51 = vld [vmem:[#allocation8 + $0x18] sm:$0xff]  }
  0xa1   :  { %3210 = vmatpush3.bf16.msra.mxu1 %v3598_v7  ;;  %3179 = vmatprep.subr.bf16.mxu0 %v3599_v8  ;;  %v3619_v52 = vld [vmem:[#allocation8 + $0x20] sm:$0xff]   ;;  %v3620_v53 = vld [vmem:[#allocation8 + $0x28] sm:$0xff]   ;;  %v3621_v54 = vld [vmem:[#allocation8 + $0x30] sm:$0xff]  }
  0xa2   :  { %3211 = vmatprep.subr.bf16.mxu1 %v3600_v9  ;;  %v3622_v55 = vld [vmem:[#allocation8 + $0x38] sm:$0xff]   ;;  %v4116_v56 = vld [vmem:[#allocation8 + $0x80] sm:$0xff]   ;;  %vm4413_vm10 = vmpackc.low %vm3901_vm7, %vm4290_vm4 }
  0xa3   :  { %v4122_v58 = vld [vmem:[%s4944_s2] ss:$0 sm:$0xff] }
  0xa4   :  { %3180 = vmatpush3.bf16.msra.mxu0 %v3599_v8  ;;  %v4129_v60 = vld [vmem:[%s4946_s4] ss:$0 sm:$0xff] }
  0xa5   :  { %3212 = vmatpush3.bf16.msra.mxu1 %v3600_v9  ;;  %3181 = vmatprep.subr.bf16.mxu0 %v3601_v10 }
  0xa6   :  { %3213 = vmatprep.subr.bf16.mxu1 %v3602_v13 }
  0xa8   :  { %3182 = vmatpush3.bf16.msra.mxu0 %v3601_v10 }
  0xa9   :  { %3214 = vmatpush3.bf16.msra.mxu1 %v3602_v13  ;;  %3183 = vmatprep.subr.bf16.mxu0 %v3603_v15 }
  0xaa   :  { %3215 = vmatprep.subr.bf16.mxu1 %v3604_v16 }
  0xac   :  { %3184 = vmatpush3.bf16.msra.mxu0 %v3603_v15  ;;  %v4145_v15 = vadd.s32 48, %v4124_v59 }
  0xad   :  { %3216 = vmatpush3.bf16.msra.mxu1 %v3604_v16  ;;  %3185 = vmatprep.subr.bf16.mxu0 %v3605_v17  ;;  %v4148_v16 = vadd.s32 64, %v4124_v59 }
  0xae   :  { %3217 = vmatprep.subr.bf16.mxu1 %v3606_v18 }
  0xb0   :  { %3186 = vmatpush3.bf16.msra.mxu0 %v3605_v17 }
  0xb1   :  { %3218 = vmatpush3.bf16.msra.mxu1 %v3606_v18  ;;  %3235 = vmatprep.subr.bf16.mxu0 %v3614_v47 }
  0xb2   :  { %3331 = vmatprep.subr.bf16.mxu1 %v3607_v23 }
  0xb3   :  { %3188 = vmatmul.mubr.bf16.vlgmr.msra.gmra.mrb[0].mxu0 %v387_v24 }
  0xb4   :  { %3220 = vmatmul.mubr.bf16.vlgmr.msra.gmra.mrb[0].mxu1 %v387_v24  ;;  %3191 = vmatprep.mubr.bf16.mxu0 %v388_v25 }
  0xb5   :  { %3223 = vmatprep.mubr.bf16.mxu1 %v388_v25  ;;  %3332 = vmatpush3.bf16.msra.mxu1 %v3607_v23  ;;  %v4959_v23 = vand.u32 15, %v4124_v59 }
  0xb6   :  { %3333 = vmatprep.subr.bf16.mxu1 %v3608_v26  ;;  %3236 = vmatpush3.bf16.msra.mxu0 %v3614_v47 }
  0xb7   :  { %3237 = vmatprep.subr.bf16.mxu0 %v3616_v49  ;;  %vm4270_vm2 = vcmp.ge.s32.totalorder %v4959_v23, 4 }
  0xb8   :  { %vm4375_vm8 = vmpackc.low %vm3901_vm7, %vm4270_vm2 }
  0xb9   :  { %3334 = vmatpush3.bf16.msra.mxu1 %v3608_v26  ;;  %v4961_v26 = vand.u32 15, %v4136_v5 }
  0xba   :  { %3335 = vmatprep.subr.bf16.mxu1 %v3609_v31  ;;  %3238 = vmatpush3.bf16.msra.mxu0 %v3616_v49 }
  0xbb   :  { %3192 = vmatmul.mubr.bf16.gmra.mrb[4].mxu0 %v389_v32  ;;  %3239 = vmatprep.subr.bf16.mxu0 %v3617_v50  ;;  %vm4280_vm3 = vcmp.ge.s32.totalorder %v4961_v26, 4 }
  0xbc   :  { %3224 = vmatmul.mubr.bf16.gmra.mrb[4].mxu1 %v389_v32  ;;  %3195 = vmatprep.mubr.bf16.mxu0 %v390_v33  ;;  %v254_v32 = vand.u32 15, %v4148_v16  ;;  %vm4402_vm9 = vmpackc.low %vm3901_vm7, %vm4280_vm3  ;;  %v3642_v16 = vld [vmem:[#allocation13 + $0x8] sm:$0xff]  }
  0xbd   :  { %3227 = vmatprep.mubr.bf16.mxu1 %v390_v33  ;;  %3336 = vmatpush3.bf16.msra.mxu1 %v3609_v31  ;;  %v240_v31 = vand.u32 15, %v4145_v15  ;;  %v3641_v15 = vld [vmem:[#allocation11 + $0x8] sm:$0xff]  }
  0xbe   :  { %3337 = vmatprep.subr.bf16.mxu1 %v3610_v34  ;;  %3240 = vmatpush3.bf16.msra.mxu0 %v3617_v50  ;;  %vm4364_vm6 = vcmp.ge.s32.totalorder %v254_v32, 4 }
  0xbf   :  { %3241 = vmatprep.subr.bf16.mxu0 %v3618_v51  ;;  %vm4349_vm5 = vcmp.ge.s32.totalorder %v240_v31, 4  ;;  %vm4560_vm12 = vmpackc.low %vm3901_vm7, %vm4364_vm6 }
  0xc0   :  { %vm4551_vm11 = vmpackc.low %vm3901_vm7, %vm4349_vm5 }
  0xc1   :  { %3338 = vmatpush3.bf16.msra.mxu1 %v3610_v34 }
  0xc2   :  { %3339 = vmatprep.subr.bf16.mxu1 %v3611_v39  ;;  %3242 = vmatpush3.bf16.msra.mxu0 %v3618_v51 }
  0xc3   :  { %3196 = vmatmul.mubr.bf16.gmra.mrb[8].mxu0 %v391_v40  ;;  %3243 = vmatprep.subr.bf16.mxu0 %v3619_v52 }
  0xc4   :  { %3228 = vmatmul.mubr.bf16.gmra.mrb[8].mxu1 %v391_v40  ;;  %3199 = vmatprep.mubr.bf16.mxu0 %v392_v41 }
  0xc5   :  { %3231 = vmatprep.mubr.bf16.mxu1 %v392_v41  ;;  %3340 = vmatpush3.bf16.msra.mxu1 %v3611_v39 }
  0xc6   :  { %3341 = vmatprep.subr.bf16.mxu1 %v3612_v45  ;;  %3244 = vmatpush3.bf16.msra.mxu0 %v3619_v52 }
  0xc7   :  { %3245 = vmatprep.subr.bf16.mxu0 %v3620_v53 }
  0xc9   :  { %3342 = vmatpush3.bf16.msra.mxu1 %v3612_v45 }
  0xca   :  { %3343 = vmatprep.subr.bf16.mxu1 %v3613_v46  ;;  %3246 = vmatpush3.bf16.msra.mxu0 %v3620_v53 }
  0xcb   :  { %3200 = vmatmul.mubr.bf16.gmra.mrb[12].mxu0 %v393_v44  ;;  %3247 = vmatprep.subr.bf16.mxu0 %v3621_v54 }
  0xcc   :  { %3232 = vmatmul.mubr.bf16.gmra.mrb[12].mxu1 %v393_v44 }
  0xcd   :  { %3344 = vmatpush3.bf16.msra.mxu1 %v3613_v46 }
  0xce   :  { %3345 = vmatprep.subr.bf16.mxu1 %v3615_v48  ;;  %3248 = vmatpush3.bf16.msra.mxu0 %v3621_v54 }
  0xcf   :  { %3249 = vmatprep.subr.bf16.mxu0 %v3622_v55 }
  0xd1   :  { %3346 = vmatpush3.bf16.msra.mxu1 %v3615_v48 }
  0xd2   :  { %3250 = vmatpush3.bf16.msra.mxu0 %v3622_v55 }
  0xd3   :  { %3267 = vmatprep.subr.bf16.mxu0 %v4116_v56 }
 0x186   :  { %v3189_v61 = vpop.f32.mrb[0].mxu0 }
 0x187   :  { %v508_v62 = vadd.f32 %v3189_v61, %v4122_v58  ;;  %v3221_v63 = vpop.f32.mrb[0].mxu1  ;;  %v499_v0 = vpop.f32.mrb[1].mxu0 }
 0x188   :  { %v692_v1 = vadd.f32 %v3221_v63, %v4129_v60  ;;  %v500_v2 = vadd.f32 %v4122_v58, %v499_v0  ;;  %v683_v3 = vpop.f32.mrb[1].mxu1  ;;  %v3190_v4 = vpop.f32.mrb[2].mxu0 }
 0x189   :  { %v564_v6 = vmax.f32 %v508_v62, 0.0  ;;  %v684_v7 = vadd.f32 %v4129_v60, %v683_v3  ;;  %v511_v8 = vadd.f32 %v3190_v4, %v4122_v58  ;;  %v3222_v9 = vpop.f32.mrb[2].mxu1  ;;  %v502_v10 = vpop.f32.mrb[3].mxu0 }
 0x18a   :  { %v562_v12 = vmax.f32 %v500_v2, 0.0  ;;  %v503_v13 = vadd.f32 %v4122_v58, %v502_v10  ;;  %v686_v14 = vpop.f32.mrb[3].mxu1  ;;  %v695_v19 = vadd.f32 %v3222_v9, %v4129_v60 }
 0x18b   :  { %v748_v17 = vadd.f32 %v692_v1, %v564_v6  ;;  %v565_v18 = vmax.f32 %v511_v8, 0.0  ;;  %v687_v22 = vadd.f32 %v4129_v60, %v686_v14 }
 0x18c   :  { %v746_v20 = vadd.f32 %v684_v7, %v562_v12  ;;  %v563_v21 = vmax.f32 %v503_v13, 0.0 }
 0x18d   :  { %v764_v24 = vmax.f32 %v748_v17, 0.0  ;;  %v749_v25 = vadd.f32 %v695_v19, %v565_v18 }
 0x18e   :  { %v4156_v28 = vmax.f32 %v746_v20, 0.0  ;;  %v747_v29 = vadd.f32 %v687_v22, %v563_v21  ;;  %v3193_v30 = vpop.f32.mrb[4].mxu0 }
 0x18f   :  { %v804_v33 = vrot.slane %v764_v24, 4  ;;  %v4160_v34 = vmax.f32 %v749_v25, 0.0  ;;  %v524_v35 = vadd.f32 %v3193_v30, %v4122_v58  ;;  %v3225_v36 = vpop.f32.mrb[4].mxu1  ;;  %v515_v37 = vpop.f32.mrb[5].mxu0  ;;  %v1215_v39 = vrot.slane %v764_v24, 6 }
 0x190   :  { %v802_v40 = vrot.slane %v4156_v28, 4  ;;  %v4167_v41 = vmax.f32 %v747_v29, 0.0  ;;  %v708_v42 = vadd.f32 %v3225_v36, %v4129_v60  ;;  %v699_v43 = vpop.f32.mrb[5].mxu1  ;;  %v3194_v44 = vpop.f32.mrb[6].mxu0  ;;  %v516_v53 = vadd.f32 %v4122_v58, %v515_v37 }
 0x191   :  { %v4171_v45 = vpack.c.bf16 %v4160_v34, %v764_v24  ;;  %v805_v46 = vrot.slane %v4160_v34, 4  ;;  %v4960_v47 = vrot.slane %v4160_v34, 6  ;;  %v568_v48 = vmax.f32 %v524_v35, 0.0  ;;  %v3226_v49 = vpop.f32.mrb[6].mxu1  ;;  %v518_v50 = vpop.f32.mrb[7].mxu0 }
 0x192   :  { %v803_v51 = vrot.slane %v4167_v41, 4  ;;  %v1214_v52 = vrot.slane %v4167_v41, 6  ;;  %v700_v54 = vadd.f32 %v4129_v60, %v699_v43  ;;  %v702_v55 = vpop.f32.mrb[7].mxu1  ;;  %v527_v63 = vadd.f32 %v3194_v44, %v4122_v58 }
 0x193   :  { %v4183_v57 = vsel %vm4963_vm0, %v804_v33, %v805_v46  ;;  %v4189_v61 = vsel %vm1229_vm1, %v1215_v39, %v4960_v47  ;;  %v752_v62 = vadd.f32 %v708_v42, %v568_v48  ;;  %v566_v2 = vmax.f32 %v516_v53, 0.0 }
 0x194   :  { %v4194_v0 = vsel %vm4963_vm0, %v803_v51, %v804_v33  ;;  %v4200_v1 = vsel %vm1229_vm1, %v1214_v52, %v1215_v39  ;;  %v711_v3 = vadd.f32 %v3226_v49, %v4129_v60  ;;  %v569_v8 = vmax.f32 %v527_v63, 0.0 }
 0x195   :  { %v4207_v7 = vmax.f32 %v752_v62, 0.0  ;;  %v1213_v9 = vrot.slane %v4156_v28, 6  ;;  %v750_v10 = vadd.f32 %v700_v54, %v566_v2  ;;  %v519_v12 = vadd.f32 %v4122_v58, %v518_v50 }
 0x196   :  { %v4213_v13 = vpack.c.bf16 %v4167_v41, %v4156_v28  ;;  %v3197_v14 = vpop.f32.mrb[8].mxu0  ;;  %v753_v18 = vadd.f32 %v711_v3, %v569_v8  ;;  %v703_v19 = vadd.f32 %v4129_v60, %v702_v55 }
 0x197   :  { %v808_v17 = vrot.slane %v4207_v7, 4  ;;  %v540_v20 = vadd.f32 %v3197_v14, %v4122_v58  ;;  %v3229_v21 = vpop.f32.mrb[8].mxu1  ;;  %v531_v22 = vpop.f32.mrb[9].mxu0  ;;  %v4218_v24 = vmax.f32 %v750_v10, 0.0  ;;  %v567_v25 = vmax.f32 %v519_v12, 0.0 }
 0x198   :  { %3347 = vmatprep.mubr.bf16.mxu1 %v4213_v13  ;;  %v724_v29 = vadd.f32 %v3229_v21, %v4129_v60  ;;  %v532_v30 = vadd.f32 %v4122_v58, %v531_v22  ;;  %v715_v33 = vpop.f32.mrb[9].mxu1  ;;  %v3198_v35 = vpop.f32.mrb[10].mxu0  ;;  %v4223_v36 = vmax.f32 %v753_v18, 0.0 }
 0x199   :  { %3348 = vmatmul.mubr.bf16.vlgmr.msra.gmra.mrb[16].mxu1 %v4171_v45  ;;  %v572_v37 = vmax.f32 %v540_v20, 0.0  ;;  %v716_v39 = vadd.f32 %v4129_v60, %v715_v33  ;;  %v543_v42 = vadd.f32 %v3198_v35, %v4122_v58  ;;  %v3230_v43 = vpop.f32.mrb[10].mxu1  ;;  %v534_v44 = vpop.f32.mrb[11].mxu0  ;;  %v806_v49 = vrot.slane %v4218_v24, 4 }
 0x19a   :  { %v751_v50 = vadd.f32 %v703_v19, %v567_v25  ;;  %v570_v53 = vmax.f32 %v532_v30, 0.0  ;;  %v718_v54 = vpop.f32.mrb[11].mxu1  ;;  %v809_v62 = vrot.slane %v4223_v36, 4  ;;  %v727_v10 = vadd.f32 %v3230_v43, %v4129_v60 }
 0x19b   :  { %v756_v63 = vadd.f32 %v724_v29, %v572_v37  ;;  %v573_v2 = vmax.f32 %v543_v42, 0.0  ;;  %v535_v12 = vadd.f32 %v4122_v58, %v534_v44  ;;  %v4241_v19 = vpack.c.bf16 %v4223_v36, %v4207_v7 }
 0x19c   :  { %v4232_v3 = vmax.f32 %v751_v50, 0.0  ;;  %v754_v8 = vadd.f32 %v716_v39, %v570_v53  ;;  %v4247_v20 = vsel %vm4963_vm0, %v802_v40, %v803_v51  ;;  %v719_v29 = vadd.f32 %v4129_v60, %v718_v54 }
 0x19d   :  { %v4237_v18 = vmax.f32 %v756_v63, 0.0  ;;  %v757_v25 = vadd.f32 %v727_v10, %v573_v2  ;;  %v571_v37 = vmax.f32 %v535_v12, 0.0  ;;  %v4981_v41 = vrot.slane %v4218_v24, 6 }
 0x19e   :  { %v807_v21 = vrot.slane %v4232_v3, 4  ;;  %v4250_v22 = vmax.f32 %v754_v8, 0.0  ;;  %v3201_v30 = vpop.f32.mrb[12].mxu0  ;;  %v1218_v33 = vrot.slane %v4232_v3, 6  ;;  %v4257_v39 = vpack.c.bf16 %v4232_v3, %v4218_v24 }
 0x19f   :  { %v812_v35 = vrot.slane %v4237_v18, 4  ;;  %v3233_v42 = vpop.f32.mrb[12].mxu1  ;;  %v547_v51 = vpop.f32.mrb[13].mxu0  ;;  %v4261_v50 = vmax.f32 %v757_v25, 0.0  ;;  %v556_v53 = vadd.f32 %v3201_v30, %v4122_v58  ;;  %v755_v2 = vadd.f32 %v719_v29, %v571_v37 }
 0x1a0   :  { %v810_v44 = vrot.slane %v4250_v22, 4  ;;  %v731_v54 = vpop.f32.mrb[13].mxu1  ;;  %v3202_v63 = vpop.f32.mrb[14].mxu0  ;;  %3351 = vmatprep.mubr.bf16.mxu1 %v4257_v39  ;;  %v740_v8 = vadd.f32 %v3233_v42, %v4129_v60  ;;  %v548_v10 = vadd.f32 %v4122_v58, %v547_v51  ;;  %v4988_v3 = vrot.slane %v4250_v22, 6 }
 0x1a1   :  { %v732_v12 = vadd.f32 %v4129_v60, %v731_v54  ;;  %v3234_v6 = vpop.f32.mrb[14].mxu1  ;;  %v550_v48 = vpop.f32.mrb[15].mxu0  ;;  %v813_v29 = vrot.slane %v4261_v50, 4  ;;  %3352 = vmatmul.mubr.bf16.gmra.mrb[20].mxu1 %v4241_v19  ;;  %v576_v37 = vmax.f32 %v556_v53, 0.0  ;;  %v559_v42 = vadd.f32 %v3202_v63, %v4122_v58 }
 0x1a2   :  { %v734_v51 = vpop.f32.mrb[15].mxu1  ;;  %v4285_v43 = vmax.f32 %v755_v2, 0.0  ;;  %v574_v14 = vmax.f32 %v548_v10, 0.0  ;;  %v551_v30 = vadd.f32 %v4122_v58, %v550_v48  ;;  %v743_v26 = vadd.f32 %v3234_v6, %v4129_v60 }
 0x1a3   :  { %v760_v63 = vadd.f32 %v740_v8, %v576_v37  ;;  %v577_v47 = vmax.f32 %v559_v42, 0.0  ;;  %v4297_v4 = vpack.c.bf16 %v4261_v50, %v4237_v18  ;;  %v735_v58 = vadd.f32 %v4129_v60, %v734_v51 }
 0x1a4   :  { %v811_v2 = vrot.slane %v4285_v43, 4  ;;  %v758_v23 = vadd.f32 %v732_v12, %v574_v14  ;;  %v575_v10 = vmax.f32 %v551_v30, 0.0  ;;  %v4305_v55 = vpack.c.bf16 %v4285_v43, %v4250_v22 }
 0x1a5   :  { %v4301_v48 = vmax.f32 %v760_v63, 0.0  ;;  %v761_v27 = vadd.f32 %v743_v26, %v577_v47  ;;  %v829_v6 = vsel %vm4963_vm0, %v806_v49, %v807_v21  ;;  %v830_v60 = vsel %vm4963_vm0, %v805_v46, %v806_v49 }
 0x1a6   :  { %v4311_v8 = vmax.f32 %v758_v23, 0.0  ;;  %v759_v37 = vadd.f32 %v735_v58, %v575_v10  ;;  %v4325_v26 = vsel %vm4963_vm0, %v808_v17, %v809_v62  ;;  %v1222_v47 = vrot.slane %v4285_v43, 6  ;;  %3355 = vmatprep.mubr.bf16.mxu1 %v4305_v55 }
 0x1a7   :  { %v816_v23 = vrot.slane %v4301_v48, 4  ;;  %v4329_v14 = vmax.f32 %v761_v27, 0.0  ;;  %v2868_v12 = vpack.c.bf16 %v829_v6, %v830_v60  ;;  %v4338_v42 = vsel %vm4963_vm0, %v807_v21, %v808_v17 }
 0x1a8   :  { %v814_v30 = vrot.slane %v4311_v8, 4  ;;  %v1225_v46 = vrot.slane %v4311_v8, 6  ;;  %v775_v49 = vmax.f32 %v759_v37, 0.0  ;;  %v2871_v17 = vpack.c.bf16 %v4325_v26, %v4338_v42 }
 0x1a9   :  { %v817_v43 = vrot.slane %v4329_v14, 4  ;;  %v1228_v51 = vrot.slane %v4329_v14, 6  ;;  %3356 = vmatmul.mubr.bf16.gmra.mrb[24].mxu1 %v4297_v4  ;;  %v4345_v27 = vpack.c.bf16 %v4329_v14, %v4301_v48  ;;  %v825_v6 = vsel %vm4963_vm0, %v810_v44, %v811_v2 }
 0x1aa   :  { %v815_v21 = vrot.slane %v775_v49, 4  ;;  %v1226_v10 = vrot.slane %v775_v49, 6  ;;  %v4356_v58 = vpack.c.bf16 %v775_v49, %v4311_v8  ;;  %v826_v26 = vsel %vm4963_vm0, %v809_v62, %v810_v44  ;;  %v3671_v8 = vld [vmem:[#allocation14] sm:$0xff]   ;;  %v3672_v62 = vld [vmem:[#allocation14 + $0x8] sm:$0xff]  }
 0x1ab   :  { %v834_v60 = vsel %vm4963_vm0, %v817_v43, %v802_v40  ;;  %v4389_v40 = vsel %vm4963_vm0, %v812_v35, %v813_v29  ;;  %v4395_v25 = vsel %vm4963_vm0, %v811_v2, %v812_v35  ;;  %v2874_v44 = vpack.c.bf16 %v825_v6, %v826_v26  ;;  %v3673_v35 = vld [vmem:[#allocation14 + $0x10] sm:$0xff]  }
 0x1ac   :  { %3359 = vmatprep.mubr.bf16.mxu1 %v4356_v58  ;;  %v2862_v14 = vpack.c.bf16 %v4247_v20, %v834_v60  ;;  %v2877_v49 = vpack.c.bf16 %v4389_v40, %v4395_v25  ;;  %v821_v42 = vsel %vm4963_vm0, %v814_v30, %v815_v21  ;;  %v3624_v20 = vld [vmem:[#allocation8 + $0x88] sm:$0xff]   ;;  %v822_v54 = vsel %vm4963_vm0, %v813_v29, %v814_v30 }
 0x1ad   :  { %v4421_v2 = vsel %vm4963_vm0, %v816_v23, %v817_v43  ;;  %v4425_v6 = vsel %vm4963_vm0, %v815_v21, %v816_v23  ;;  %v4433_v53 = vsel %vm1229_vm1, %v1213_v9, %v1214_v52  ;;  %v2880_v29 = vpack.c.bf16 %v821_v42, %v822_v54 }
 0x1ae   :  { %3251 = vmatprep.mubr.msk.bf16.mxu0 %vm4375_vm8, %v2862_v14  ;;  %v2883_v30 = vpack.c.bf16 %v4421_v2, %v4425_v6  ;;  %v4443_v23 = vsel %vm1229_vm1, %v1228_v51, %v1213_v9  ;;  %v4451_v52 = vsel %vm1229_vm1, %v4981_v41, %v1218_v33  ;;  %v4982_v43 = vpack.c.bf16 %v4183_v57, %v4194_v0 }
 0x1af   :  { %v2902_v28 = vpack.c.bf16 %v4433_v53, %v4443_v23  ;;  %v4983_v9 = vmov %v4981_v41  ;;  %v4984_v21 = vrot.slane %v4160_v34, 6  ;;  %v4985_v26 = vrot.slane %v4223_v36, 6  ;;  %v3649_v53 = vld [vmem:[#allocation11 + $0x28] sm:$0xff]  }
 0x1b0   :  { %3252 = vmatmul.mubr.msk.bf16.vlgmr.msra.gmra.mrb[16].mxu0 %vm4402_vm9, %v4982_v43  ;;  %v4986_v40 = vrot.slane %v4207_v7, 6  ;;  %v4488_v34 = vadd.s32 96, %v4124_v59  ;;  %v4989_v14 = vmov %v4988_v3  ;;  %v4991_v2 = vrot.slane %v4261_v50, 6  ;;  %v3650_v23 = vld [vmem:[#allocation13 + $0x28] sm:$0xff]   ;;  %v3674_v50 = vld [vmem:[#allocation14 + $0x18] sm:$0xff]  }
 0x1b1   :  { %v4466_v60 = vsel %vm1229_vm1, %v4984_v21, %v4983_v9  ;;  %3268 = vmatpush3.bf16.msra.mxu0 %v4116_v56  ;;  %3255 = vmatprep.mubr.msk.bf16.mxu0 %vm4413_vm10, %v2868_v12  ;;  %v1227_v56 = vrot.slane %v4301_v48, 6  ;;  %v3625_v12 = vld [vmem:[#allocation8 + $0x90] sm:$0xff]   ;;  %v4990_v42 = vmov %v4985_v26  ;;  %v4992_v6 = vrot.slane %v4237_v18, 6 }
 0x1b2   :  { %v4474_v57 = vsel %vm1229_vm1, %v4986_v40, %v4985_v26  ;;  %v4987_v0 = vmov %v4986_v40  ;;  %v2908_v25 = vpack.c.bf16 %v4451_v52, %v4466_v60  ;;  %3360 = vmatmul.mubr.bf16.gmra.mrb[28].mxu1 %v4345_v27  ;;  %3269 = vmatprep.subr.bf16.mxu0 %v3624_v20  ;;  %v4508_v54 = vsel %vm1229_vm1, %v4990_v42, %v4989_v14  ;;  %v3630_v42 = vld [vmem:[#allocation8 + $0xb8] sm:$0xff]   ;;  %v3651_v52 = vld [vmem:[#allocation11 + $0x30] sm:$0xff]  }
 0x1b3   :  { %v4482_v24 = vsel %vm1229_vm1, %v1218_v33, %v4987_v0  ;;  %v4498_v33 = vsel %vm1229_vm1, %v4988_v3, %v1222_v47  ;;  %v4516_v41 = vsel %vm1229_vm1, %v4992_v6, %v4991_v2  ;;  %v4993_v48 = vmov %v4992_v6  ;;  %v3627_v0 = vld [vmem:[#allocation8 + $0xa0] sm:$0xff]   ;;  %v3634_v6 = vld [vmem:[#allocation8 + $0x58] sm:$0xff]  }
 0x1b4   :  { %v2911_v7 = vpack.c.bf16 %v4474_v57, %v4482_v24  ;;  %v4522_v43 = vsel %vm1229_vm1, %v1222_v47, %v4993_v48  ;;  %v2914_v36 = vpack.c.bf16 %v4498_v33, %v4508_v54  ;;  %v4530_v9 = vsel %vm1229_vm1, %v1225_v46, %v1226_v10  ;;  %v3653_v60 = vld [vmem:[#allocation11 + $0x38] sm:$0xff]   ;;  %v4657_v24 = vld [vmem:[#allocation11 + $0x80] sm:$0xff]  }
 0x1b5   :  { %v2917_v22 = vpack.c.bf16 %v4516_v41, %v4522_v43  ;;  %v4994_v21 = vmov %v4991_v2  ;;  %v4542_v47 = vsel %vm1229_vm1, %v1227_v56, %v1228_v51  ;;  %v4546_v40 = vsel %vm1229_vm1, %v1226_v10, %v1227_v56  ;;  %3270 = vmatpush3.bf16.msra.mxu0 %v3624_v20  ;;  %v3626_v10 = vld [vmem:[#allocation8 + $0x98] sm:$0xff]   ;;  %v3633_v2 = vld [vmem:[#allocation8 + $0x50] sm:$0xff]   ;;  %v3675_v51 = vld [vmem:[#allocation14 + $0x20] sm:$0xff]  }
 0x1b6   :  { %v4536_v26 = vsel %vm1229_vm1, %v4994_v21, %v1225_v46  ;;  %v2923_v46 = vpack.c.bf16 %v4542_v47, %v4546_v40  ;;  %3271 = vmatprep.subr.bf16.mxu0 %v3625_v12  ;;  %v268_v20 = vand.u32 15, %v4164_v38  ;;  %v282_v63 = vand.u32 15, %v4488_v34  ;;  %v3645_v38 = vld [vmem:[#allocation11 + $0x18] sm:$0xff]  }
 0x1b7   :  { %v2920_v18 = vpack.c.bf16 %v4530_v9, %v4536_v26  ;;  %v4573_v37 = vadd.s32 112, %v4124_v59  ;;  %v3654_v57 = vld [vmem:[#allocation13 + $0x38] sm:$0xff]   ;;  %v3902_v34 = vmov 0.0  }
 0x1b8   :  { %3256 = vmatmul.mubr.msk.bf16.gmra.mrb[20].mxu0 %vm4551_vm11, %v2871_v17  ;;  %vm845_vm13 = vcmp.ge.s32.totalorder %v268_v20, 4  ;;  %vm847_vm14 = vcmp.ge.s32.totalorder %v282_v63, 4 }
 0x1b9   :  { %3272 = vmatpush3.bf16.msra.mxu0 %v3625_v12  ;;  %3259 = vmatprep.mubr.msk.bf16.mxu0 %vm4560_vm12, %v2874_v44  ;;  %vm4578_vm15 = vmpackc.low %vm3901_vm7, %vm845_vm13  ;;  %v3628_v44 = vld [vmem:[#allocation8 + $0xa8] sm:$0xff]   ;;  %v296_v56 = vand.u32 15, %v4573_v37  ;;  %v3629_v12 = vld [vmem:[#allocation8 + $0xb0] sm:$0xff]  }
 0x1ba   :  { %3273 = vmatprep.subr.bf16.mxu0 %v3626_v10  ;;  %vm4583_vm1 = vmpackc.low %vm3901_vm7, %vm847_vm14 }
 0x1bb   :  { %vm849_vm2 = vcmp.ge.s32.totalorder %v296_v56, 4 }
 0x1bc   :  { %vm4595_vm3 = vmpackc.low %vm3901_vm7, %vm849_vm2 }
 0x1bd   :  { %3274 = vmatpush3.bf16.msra.mxu0 %v3626_v10  ;;  %v4674_v10 = vld [vmem:[%s4948_s6] ss:$0 sm:$0xff] }
 0x1be   :  { %3275 = vmatprep.subr.bf16.mxu0 %v3627_v0 }
 0x1c0   :  { %3260 = vmatmul.mubr.msk.bf16.gmra.mrb[24].mxu0 %vm4578_vm15, %v2877_v49  ;;  %v3631_v49 = vld [vmem:[#allocation8 + $0x40] sm:$0xff]  }
 0x1c1   :  { %3276 = vmatpush3.bf16.msra.mxu0 %v3627_v0  ;;  %3263 = vmatprep.mubr.msk.bf16.mxu0 %vm4583_vm1, %v2880_v29  ;;  %v3632_v29 = vld [vmem:[#allocation8 + $0x48] sm:$0xff]  }
 0x1c2   :  { %3277 = vmatprep.subr.bf16.mxu0 %v3628_v44 }
 0x1c5   :  { %3278 = vmatpush3.bf16.msra.mxu0 %v3628_v44 }
 0x1c6   :  { %3279 = vmatprep.subr.bf16.mxu0 %v3629_v12 }
 0x1c8   :  { %3264 = vmatmul.mubr.msk.bf16.gmra.mrb[28].mxu0 %vm4595_vm3, %v2883_v30  ;;  %v3636_v30 = vld [vmem:[#allocation8 + $0x68] sm:$0xff]  }
 0x1c9   :  { %3280 = vmatpush3.bf16.msra.mxu0 %v3629_v12  ;;  %3283 = vmatprep.mubr.bf16.mxu0 %v4213_v13  ;;  %v3635_v13 = vld [vmem:[#allocation8 + $0x60] sm:$0xff]  }
 0x1ca   :  { %3281 = vmatprep.subr.bf16.mxu0 %v3630_v42 }
 0x1cd   :  { %3282 = vmatpush3.bf16.msra.mxu0 %v3630_v42 }
 0x1ce   :  { %3299 = vmatprep.subr.bf16.mxu0 %v3631_v49 }
 0x1d0   :  { %3284 = vmatmul.mubr.bf16.vlgmr.msra.gmra.mrb[16].mxu0 %v4171_v45  ;;  %v3637_v45 = vld [vmem:[#allocation8 + $0x70] sm:$0xff]  }
 0x1d1   :  { %3300 = vmatpush3.bf16.msra.mxu0 %v3631_v49  ;;  %3287 = vmatprep.mubr.bf16.mxu0 %v4257_v39  ;;  %v5005_v39 = vand.u32 15, %v4124_v59 }
 0x1d2   :  { %3301 = vmatprep.subr.bf16.mxu0 %v3632_v29 }
 0x1d3   :  { %vm1246_vm4 = vcmp.ge.s32.totalorder %v5005_v39, 2 }
 0x1d4   :  { %vm2901_vm5 = vmpackc.low %vm3901_vm7, %vm1246_vm4  ;;  %vm1252_vm4 = vcmp.ge.s32.totalorder %v240_v31, 2  ;;  %v3643_v31 = vld [vmem:[#allocation11 + $0x10] sm:$0xff]  }
 0x1d5   :  { %3302 = vmatpush3.bf16.msra.mxu0 %v3632_v29  ;;  %vm2910_vm0 = vmpackc.low %vm3901_vm7, %vm1252_vm4 }
 0x1d6   :  { %3303 = vmatprep.subr.bf16.mxu0 %v3633_v2 }
 0x1d8   :  { %3288 = vmatmul.mubr.bf16.gmra.mrb[20].mxu0 %v4241_v19  ;;  %v5007_v19 = vand.u32 15, %v4141_v11  ;;  %v3640_v11 = vld [vmem:[#allocation13] sm:$0xff]  }
 0x1d9   :  { %3304 = vmatpush3.bf16.msra.mxu0 %v3633_v2  ;;  %3291 = vmatprep.mubr.bf16.mxu0 %v4305_v55  ;;  %v3638_v55 = vld [vmem:[#allocation8 + $0x78] sm:$0xff]  }
 0x1da   :  { %3305 = vmatprep.subr.bf16.mxu0 %v3634_v6  ;;  %vm1250_vm13 = vcmp.ge.s32.totalorder %v5007_v19, 2 }
 0x1db   :  { %vm2907_vm2 = vmpackc.low %vm3901_vm7, %vm1250_vm13  ;;  %vm1256_vm13 = vcmp.ge.s32.totalorder %v268_v20, 2  ;;  %v4679_v20 = vld [vmem:[%s4950_s8] ss:$0 sm:$0xff] }
 0x1dd   :  { %3306 = vmatpush3.bf16.msra.mxu0 %v3634_v6 }
 0x1de   :  { %3307 = vmatprep.subr.bf16.mxu0 %v3635_v13 }
 0x1e0   :  { %3292 = vmatmul.mubr.bf16.gmra.mrb[24].mxu0 %v4297_v4  ;;  %v5006_v4 = vand.u32 15, %v4136_v5  ;;  %v3639_v5 = vld [vmem:[#allocation11] sm:$0xff]  }
 0x1e1   :  { %3308 = vmatpush3.bf16.msra.mxu0 %v3635_v13  ;;  %3295 = vmatprep.mubr.bf16.mxu0 %v4356_v58  ;;  %v3648_v58 = vld [vmem:[#allocation13 + $0x20] sm:$0xff]  }
 0x1e2   :  { %3309 = vmatprep.subr.bf16.mxu0 %v3636_v30  ;;  %vm1248_vm6 = vcmp.ge.s32.totalorder %v5006_v4, 2  ;;  %3363 = vmatprep.subr.bf16.mxu1 %v3639_v5 }
 0x1e3   :  { %vm2904_vm14 = vmpackc.low %vm3901_vm7, %vm1248_vm6  ;;  %3364 = vmatpush3.bf16.msra.mxu1 %v3639_v5 }
 0x1e4   :  { %3365 = vmatprep.subr.bf16.mxu1 %v3641_v15 }
 0x1e5   :  { %3310 = vmatpush3.bf16.msra.mxu0 %v3636_v30 }
 0x1e6   :  { %3311 = vmatprep.subr.bf16.mxu0 %v3637_v45 }
 0x1e7   :  { %3366 = vmatpush3.bf16.msra.mxu1 %v3641_v15 }
 0x1e8   :  { %3296 = vmatmul.mubr.bf16.gmra.mrb[28].mxu0 %v4345_v27  ;;  %v5008_v27 = vpack.c.bf16 %v4189_v61, %v4200_v1  ;;  %3367 = vmatprep.subr.bf16.mxu1 %v3643_v31  ;;  %v3646_v61 = vld [vmem:[#allocation13 + $0x18] sm:$0xff]   ;;  %v3647_v1 = vld [vmem:[#allocation11 + $0x20] sm:$0xff]  }
 0x1e9   :  { %3312 = vmatpush3.bf16.msra.mxu0 %v3637_v45  ;;  %3315 = vmatprep.mubr.msk.bf16.mxu0 %vm2901_vm5, %v2902_v28  ;;  %vm1254_vm5 = vcmp.ge.s32.totalorder %v254_v32, 2  ;;  %v3644_v32 = vld [vmem:[#allocation13 + $0x10] sm:$0xff]  }
 0x1ea   :  { %3313 = vmatprep.subr.bf16.mxu0 %v3638_v55  ;;  %vm2913_vm6 = vmpackc.low %vm3901_vm7, %vm1254_vm5  ;;  %v3652_v28 = vld [vmem:[#allocation13 + $0x30] sm:$0xff]  }
 0x1eb   :  { %3368 = vmatpush3.bf16.msra.mxu1 %v3643_v31 }
 0x1ec   :  { %3369 = vmatprep.subr.bf16.mxu1 %v3645_v38 }
 0x1ed   :  { %3314 = vmatpush3.bf16.msra.mxu0 %v3638_v55 }
 0x1ee   :  { %3459 = vmatprep.subr.bf16.mxu0 %v3640_v11 }
 0x1ef   :  { %3370 = vmatpush3.bf16.msra.mxu1 %v3645_v38 }
 0x1f0   :  { %3316 = vmatmul.mubr.msk.bf16.vlgmr.msra.gmra.mrb[16].mxu0 %vm2904_vm14, %v5008_v27  ;;  %vm1258_vm14 = vcmp.ge.s32.totalorder %v282_v63, 2  ;;  %3371 = vmatprep.subr.bf16.mxu1 %v3647_v1 }
 0x1f1   :  { %3319 = vmatprep.mubr.msk.bf16.mxu0 %vm2907_vm2, %v2908_v25  ;;  %vm2916_vm2 = vmpackc.low %vm3901_vm7, %vm1256_vm13  ;;  %3460 = vmatpush3.bf16.msra.mxu0 %v3640_v11 }
 0x1f2   :  { %vm2919_vm4 = vmpackc.low %vm3901_vm7, %vm1258_vm14  ;;  %3461 = vmatprep.subr.bf16.mxu0 %v3642_v16 }
 0x1f3   :  { %3372 = vmatpush3.bf16.msra.mxu1 %v3647_v1 }
 0x1f4   :  { %3373 = vmatprep.subr.bf16.mxu1 %v3649_v53 }
 0x1f5   :  { %3462 = vmatpush3.bf16.msra.mxu0 %v3642_v16 }
 0x1f6   :  { %3463 = vmatprep.subr.bf16.mxu0 %v3644_v32 }
 0x1f7   :  { %3374 = vmatpush3.bf16.msra.mxu1 %v3649_v53 }
 0x1f8   :  { %3320 = vmatmul.mubr.msk.bf16.gmra.mrb[20].mxu0 %vm2910_vm0, %v2911_v7  ;;  %vm1260_vm0 = vcmp.ge.s32.totalorder %v296_v56, 2  ;;  %3375 = vmatprep.subr.bf16.mxu1 %v3651_v52 }
 0x1f9   :  { %3323 = vmatprep.mubr.msk.bf16.mxu0 %vm2913_vm6, %v2914_v36  ;;  %vm2922_vm5 = vmpackc.low %vm3901_vm7, %vm1260_vm0  ;;  %3464 = vmatpush3.bf16.msra.mxu0 %v3644_v32  ;;  %vm5009_vm7 = vcmp.lt.s32.totalorder %v4124_v59, 4  ;;  %v3666_v59 = vld [vmem:[#allocation11 + $0x58] sm:$0xff]  }
 0x1fa   :  { %3465 = vmatprep.subr.bf16.mxu0 %v3646_v61  ;;  %vm5010_vm6 = vmmov %vm5009_vm7 }
 0x1fb   :  { %3376 = vmatpush3.bf16.msra.mxu1 %v3651_v52  ;;  %vm5011_vm13 = vmmov %vm5010_vm6 }
 0x1fc   :  { %3377 = vmatprep.subr.bf16.mxu1 %v3653_v60  ;;  %vm5012_vm14 = vmmov %vm5010_vm6 }
 0x1fd   :  { %3466 = vmatpush3.bf16.msra.mxu0 %v3646_v61 }
 0x1fe   :  { %3467 = vmatprep.subr.bf16.mxu0 %v3648_v58 }
 0x1ff   :  { %3378 = vmatpush3.bf16.msra.mxu1 %v3653_v60 }
 0x200   :  { %3324 = vmatmul.mubr.msk.bf16.gmra.mrb[24].mxu0 %vm2916_vm2, %v2917_v22  ;;  %3395 = vmatprep.subr.bf16.mxu1 %v4657_v24  ;;  %vm5013_vm2 = vmmov %vm5010_vm6 }
 0x201   :  { %3327 = vmatprep.mubr.msk.bf16.mxu0 %vm2919_vm4, %v2920_v18  ;;  %3468 = vmatpush3.bf16.msra.mxu0 %v3648_v58  ;;  %vm5014_vm4 = vmmov %vm5013_vm2 }
 0x202   :  { %3469 = vmatprep.subr.bf16.mxu0 %v3650_v23  ;;  %vm5015_vm0 = vmmov %vm5013_vm2 }
 0x205   :  { %3470 = vmatpush3.bf16.msra.mxu0 %v3650_v23 }
 0x206   :  { %3471 = vmatprep.subr.bf16.mxu0 %v3652_v28 }
 0x208   :  { %3328 = vmatmul.mubr.msk.bf16.gmra.mrb[28].mxu0 %vm2922_vm5, %v2923_v46  ;;  %vm5016_vm5 = vmmov %vm5015_vm0 }
 0x209   :  { %3472 = vmatpush3.bf16.msra.mxu0 %v3652_v28 }
 0x20a   :  { %3473 = vmatprep.subr.bf16.mxu0 %v3654_v57 }
 0x20d   :  { %3474 = vmatpush3.bf16.msra.mxu0 %v3654_v57 }
 0x20e   :  { %3491 = vmatprep.subr.bf16.mxu0 %v3902_v34 }
 0x26c   :  { %v3349_v25 = vpop.f32.mrb[16].mxu1 }
 0x26d   :  { %v1639_v7 = vpop.f32.mrb[17].mxu1  ;;  %v1648_v12 = vadd.f32 %v3349_v25, %v4679_v20 }
 0x26e   :  { %v3350_v33 = vpop.f32.mrb[18].mxu1  ;;  %v1640_v2 = vadd.f32 %v4679_v20, %v1639_v7 }
 0x26f   :  { %v1642_v54 = vpop.f32.mrb[19].mxu1  ;;  %v1651_v30 = vadd.f32 %v3350_v33, %v4679_v20 }
 0x270   :  { %v1643_v45 = vadd.f32 %v4679_v20, %v1642_v54 }
 0x274   :  { %v3353_v41 = vpop.f32.mrb[20].mxu1 }
 0x275   :  { %v1655_v48 = vpop.f32.mrb[21].mxu1  ;;  %v1664_v4 = vadd.f32 %v3353_v41, %v4679_v20 }
 0x276   :  { %v3354_v43 = vpop.f32.mrb[22].mxu1  ;;  %v1656_v19 = vadd.f32 %v4679_v20, %v1655_v48 }
 0x277   :  { %v1658_v36 = vpop.f32.mrb[23].mxu1  ;;  %v1667_v11 = vadd.f32 %v3354_v43, %v4679_v20 }
 0x278   :  { %v1659_v15 = vadd.f32 %v4679_v20, %v1658_v36 }
 0x27c   :  { %v3357_v22 = vpop.f32.mrb[24].mxu1 }
 0x27d   :  { %v1671_v9 = vpop.f32.mrb[25].mxu1  ;;  %v4694_v32 = vadd.f32 %v3357_v22, %v4679_v20 }
 0x27e   :  { %v3358_v21 = vpop.f32.mrb[26].mxu1  ;;  %v4697_v38 = vadd.f32 %v4679_v20, %v1671_v9  ;;  %v3656_v9 = vld [vmem:[#allocation11 + $0x88] sm:$0xff]  }
 0x27f   :  { %v4661_v26 = vpop.f32.mrb[27].mxu1 }
 0x285   :  { %v4663_v18 = vpop.f32.mrb[28].mxu1 }
 0x286   :  { %v4665_v47 = vpop.f32.mrb[29].mxu1 }
 0x287   :  { %v4667_v40 = vpop.f32.mrb[30].mxu1 }
 0x288   :  { %v4669_v46 = vpop.f32.mrb[31].mxu1 }
 0x2c3   :  { %v3317_v63 = vpop.f32.mrb[16].mxu0 }
 0x2c4   :  { %v1504_v0 = vadd.f32 %v3317_v63, %v4674_v10  ;;  %v1416_v37 = vpop.f32.mrb[17].mxu0 }
 0x2c5   :  { %v1502_v44 = vadd.f32 %v4674_v10, %v1416_v37  ;;  %v3318_v56 = vpop.f32.mrb[18].mxu0 }
 0x2c6   :  { %v1520_v42 = vmax.f32 %v1504_v0, 0.0  ;;  %v1505_v49 = vadd.f32 %v3318_v56, %v4674_v10  ;;  %v1419_v29 = vpop.f32.mrb[19].mxu0  ;;  %v1683_v56 = vadd.f32 %v3358_v21, %v4679_v20 }
 0x2c7   :  { %v1518_v6 = vmax.f32 %v1502_v44, 0.0  ;;  %v1503_v13 = vadd.f32 %v4674_v10, %v1419_v29 }
 0x2c8   :  { %v1704_v39 = vadd.f32 %v1648_v12, %v1520_v42  ;;  %v1521_v55 = vmax.f32 %v1505_v49, 0.0 }
 0x2c9   :  { %v1702_v27 = vadd.f32 %v1640_v2, %v1518_v6  ;;  %v1519_v5 = vmax.f32 %v1503_v13, 0.0  ;;  %v1675_v13 = vadd.f32 %v4679_v20, %v4661_v26 }
 0x2ca   :  { %v1720_v16 = vmax.f32 %v1704_v39, 0.0  ;;  %v1705_v31 = vadd.f32 %v1651_v30, %v1521_v55  ;;  %v4738_v55 = vadd.f32 %v4663_v18, %v4679_v20 }
 0x2cb   :  { %v4699_v61 = vmax.f32 %v1702_v27, 0.0  ;;  %v1703_v1 = vadd.f32 %v1643_v45, %v1519_v5  ;;  %v3321_v58 = vpop.f32.mrb[20].mxu0 }
 0x2cc   :  { %v1823_v53 = vpack.c.bf16 %v1720_v16, %v3902_v34  ;;  %v2138_v23 = vrot.slane %v1720_v16, 4  ;;  %v1721_v52 = vmax.f32 %v1705_v31, 0.0  ;;  %v1508_v28 = vadd.f32 %v3321_v58, %v4674_v10  ;;  %v1432_v60 = vpop.f32.mrb[21].mxu0 }
 0x2cd   :  { %v2136_v57 = vrot.slane %v4699_v61, 4  ;;  %v1719_v25 = vmax.f32 %v1703_v1, 0.0  ;;  %v1506_v7 = vadd.f32 %v4674_v10, %v1432_v60  ;;  %v3322_v33 = vpop.f32.mrb[22].mxu0  ;;  %v1822_v54 = vpack.c.bf16 %v4699_v61, %v3902_v34 }
 0x2ce   :  { %v4707_v41 = vpack.c.bf16 %v1721_v52, %v1720_v16  ;;  %v2139_v48 = vrot.slane %v1721_v52, 4  ;;  %v1524_v43 = vmax.f32 %v1508_v28, 0.0  ;;  %v1509_v36 = vadd.f32 %v3322_v33, %v4674_v10  ;;  %v1435_v22 = vpop.f32.mrb[23].mxu0 }
 0x2cf   :  { %v2137_v63 = vrot.slane %v1719_v25, 4  ;;  %v1522_v0 = vmax.f32 %v1506_v7, 0.0  ;;  %v1507_v37 = vadd.f32 %v4674_v10, %v1435_v22  ;;  %3379 = vmatprep.mubr.bf16.mxu1 %v1822_v54  ;;  %v4712_v44 = vpack.c.bf16 %v1719_v25, %v4699_v61  ;;  %v3658_v7 = vld [vmem:[#allocation11 + $0x98] sm:$0xff]   ;;  %v3663_v61 = vld [vmem:[#allocation11 + $0x40] sm:$0xff]  }
 0x2d0   :  { %v4717_v12 = vsel %vm5009_vm7, %v2138_v23, %v2139_v48  ;;  %v1708_v42 = vadd.f32 %v1664_v4, %v1524_v43  ;;  %v1525_v49 = vmax.f32 %v1509_v36, 0.0  ;;  %3380 = vmatmul.mubr.bf16.vlgmr.msra.gmra.mrb[32].mxu1 %v1823_v53  ;;  %v4742_v4 = vadd.f32 %v4679_v20, %v4665_v47  ;;  %vm5017_vm7 = vmmov %vm5015_vm0 }
 0x2d1   :  { %v4721_v29 = vsel %vm5010_vm6, %v2137_v63, %v2138_v23  ;;  %v1706_v2 = vadd.f32 %v1656_v19, %v1522_v0  ;;  %v1523_v6 = vmax.f32 %v1507_v37, 0.0  ;;  %3396 = vmatpush3.bf16.msra.mxu1 %v4657_v24  ;;  %3475 = vmatprep.mubr.bf16.mxu0 %v4712_v44  ;;  %v4729_v21 = vsel %vm5011_vm13, %v2136_v57, %v2137_v63  ;;  %v3657_v24 = vld [vmem:[#allocation11 + $0x90] sm:$0xff]   ;;  %vm5018_vm6 = vmmov %vm5015_vm0 }
 0x2d2   :  { %v2963_v30 = vpack.c.bf16 %v4717_v12, %v4721_v29  ;;  %v1724_v45 = vmax.f32 %v1708_v42, 0.0  ;;  %v1709_v39 = vadd.f32 %v1667_v11, %v1525_v49  ;;  %3476 = vmatmul.mubr.bf16.vlgmr.msra.gmra.mrb[32].mxu0 %v4707_v41  ;;  %3397 = vmatprep.subr.bf16.mxu1 %v3656_v9  ;;  %vm5019_vm13 = vmmov %vm5015_vm0  ;;  %v3676_v12 = vld [vmem:[#allocation14 + $0x28] sm:$0xff]  }
 0x2d3   :  { %v1722_v19 = vmax.f32 %v1706_v2, 0.0  ;;  %v1707_v27 = vadd.f32 %v1659_v15, %v1523_v6  ;;  %v3325_v26 = vpop.f32.mrb[24].mxu0  ;;  %v3659_v6 = vld [vmem:[#allocation11 + $0xa0] sm:$0xff]   ;;  %3492 = vmatpush3.bf16.msra.mxu0 %v3671_v8 }
 0x2d4   :  { %v2142_v5 = vrot.slane %v1724_v45, 4  ;;  %v1725_v16 = vmax.f32 %v1709_v39, 0.0  ;;  %v1512_v31 = vadd.f32 %v3325_v26, %v4674_v10  ;;  %v1448_v11 = vpop.f32.mrb[25].mxu0  ;;  %v1825_v1 = vpack.c.bf16 %v1724_v45, %v3902_v34  ;;  %3493 = vmatprep.subr.bf16.mxu0 %v3902_v34 }
 0x2d5   :  { %v2140_v58 = vrot.slane %v1722_v19, 4  ;;  %v1723_v53 = vmax.f32 %v1707_v27, 0.0  ;;  %v1510_v23 = vadd.f32 %v4674_v10, %v1448_v11  ;;  %3398 = vmatpush3.bf16.msra.mxu1 %v3656_v9  ;;  %v3326_v18 = vpop.f32.mrb[26].mxu0  ;;  %v1824_v52 = vpack.c.bf16 %v1722_v19, %v3902_v34 }
 0x2d6   :  { %v2143_v47 = vrot.slane %v1725_v16, 4  ;;  %v1528_v28 = vmax.f32 %v1512_v31, 0.0  ;;  %v1513_v15 = vadd.f32 %v3326_v18, %v4674_v10  ;;  %v1451_v60 = vpop.f32.mrb[27].mxu0  ;;  %3399 = vmatprep.subr.bf16.mxu1 %v3657_v24  ;;  %v4749_v25 = vpack.c.bf16 %v1725_v16, %v1724_v45 }
 0x2d7   :  { %v2141_v33 = vrot.slane %v1723_v53, 4  ;;  %v1526_v54 = vmax.f32 %v1510_v23, 0.0  ;;  %v1511_v43 = vadd.f32 %v4674_v10, %v1451_v60  ;;  %3383 = vmatprep.mubr.bf16.mxu1 %v1824_v52  ;;  %v4752_v36 = vpack.c.bf16 %v1723_v53, %v1722_v19  ;;  %3494 = vmatpush3.bf16.msra.mxu0 %v3672_v62 }
 0x2d8   :  { %v1712_v22 = vadd.f32 %v4694_v32, %v1528_v28  ;;  %v1529_v9 = vmax.f32 %v1513_v15, 0.0  ;;  %3384 = vmatmul.mubr.bf16.gmra.mrb[36].mxu1 %v1825_v1  ;;  %v4757_v63 = vsel %vm5012_vm14, %v2139_v48, %v2140_v58  ;;  %v4761_v0 = vsel %vm5013_vm2, %v2142_v5, %v2143_v47  ;;  %v3660_v28 = vld [vmem:[#allocation11 + $0xa8] sm:$0xff]   ;;  %vm5020_vm14 = vmmov %vm5015_vm0  ;;  %3495 = vmatprep.subr.bf16.mxu0 %v3902_v34 }
 0x2d9   :  { %v1710_v37 = vadd.f32 %v4697_v38, %v1526_v54  ;;  %v1527_v42 = vmax.f32 %v1511_v43, 0.0  ;;  %3400 = vmatpush3.bf16.msra.mxu1 %v3657_v24  ;;  %3479 = vmatprep.mubr.bf16.mxu0 %v4752_v36  ;;  %v4767_v49 = vsel %vm5014_vm4, %v2140_v58, %v2141_v33  ;;  %v4771_v32 = vsel %vm5015_vm0, %v2141_v33, %v2142_v5  ;;  %vm5021_vm2 = vmmov %vm5015_vm0 }
 0x2da   :  { %v1728_v48 = vmax.f32 %v1712_v22, 0.0  ;;  %v1713_v2 = vadd.f32 %v1683_v56, %v1529_v9  ;;  %3480 = vmatmul.mubr.bf16.gmra.mrb[36].mxu0 %v4749_v25  ;;  %3401 = vmatprep.subr.bf16.mxu1 %v3658_v7  ;;  %v2966_v38 = vpack.c.bf16 %v4767_v49, %v4757_v63  ;;  %v2969_v45 = vpack.c.bf16 %v4761_v0, %v4771_v32  ;;  %vm5022_vm4 = vmmov %vm5015_vm0  ;;  %v3678_v49 = vld [vmem:[#allocation14 + $0x38] sm:$0xff]  }
 0x2db   :  { %v1699_v39 = vadd.f32 %v4667_v40, %v4679_v20  ;;  %v1691_v24 = vadd.f32 %v4679_v20, %v4669_v46  ;;  %v1726_v19 = vmax.f32 %v1710_v37, 0.0  ;;  %v1711_v27 = vadd.f32 %v1675_v13, %v1527_v42  ;;  %v3329_v26 = vpop.f32.mrb[28].mxu0  ;;  %3496 = vmatpush3.bf16.msra.mxu0 %v3673_v35 }
 0x2dc   :  { %v2146_v56 = vrot.slane %v1728_v48, 4  ;;  %v1729_v5 = vmax.f32 %v1713_v2, 0.0  ;;  %v1516_v16 = vadd.f32 %v3329_v26, %v4674_v10  ;;  %v1464_v31 = vpop.f32.mrb[29].mxu0  ;;  %v1827_v11 = vpack.c.bf16 %v1728_v48, %v3902_v34  ;;  %v3661_v2 = vld [vmem:[#allocation11 + $0xb0] sm:$0xff]   ;;  %3497 = vmatprep.subr.bf16.mxu0 %v3902_v34 }
 0x2dd   :  { %v2144_v1 = vrot.slane %v1726_v19, 4  ;;  %v1727_v58 = vmax.f32 %v1711_v27, 0.0  ;;  %v1514_v53 = vadd.f32 %v4674_v10, %v1464_v31  ;;  %3402 = vmatpush3.bf16.msra.mxu1 %v3658_v7  ;;  %v3330_v23 = vpop.f32.mrb[30].mxu0  ;;  %v1826_v40 = vpack.c.bf16 %v1726_v19, %v3902_v34 }
 0x2de   :  { %v2147_v18 = vrot.slane %v1729_v5, 4  ;;  %v1532_v46 = vmax.f32 %v1516_v16, 0.0  ;;  %v1517_v20 = vadd.f32 %v3330_v23, %v4674_v10  ;;  %v1467_v13 = vpop.f32.mrb[31].mxu0  ;;  %3403 = vmatprep.subr.bf16.mxu1 %v3659_v6  ;;  %v4787_v52 = vpack.c.bf16 %v1729_v5, %v1728_v48 }
 0x2df   :  { %v2145_v15 = vrot.slane %v1727_v58, 4  ;;  %v1530_v60 = vmax.f32 %v1514_v53, 0.0  ;;  %v1515_v33 = vadd.f32 %v4674_v10, %v1467_v13  ;;  %3387 = vmatprep.mubr.bf16.mxu1 %v1826_v40  ;;  %v1738_v54 = vpack.c.bf16 %v1727_v58, %v1726_v19  ;;  %v3662_v58 = vld [vmem:[#allocation11 + $0xb8] sm:$0xff]   ;;  %3498 = vmatpush3.bf16.msra.mxu0 %v3674_v50 }
 0x2e0   :  { %v1716_v7 = vadd.f32 %v4738_v55, %v1532_v46  ;;  %v1533_v43 = vmax.f32 %v1517_v20, 0.0  ;;  %3388 = vmatmul.mubr.bf16.gmra.mrb[40].mxu1 %v1827_v11  ;;  %v4793_v22 = vsel %vm5016_vm5, %v2143_v47, %v2144_v1  ;;  %v4797_v9 = vsel %vm5017_vm7, %v2146_v56, %v2147_v18  ;;  %vm5023_vm5 = vmmov %vm5015_vm0  ;;  %3499 = vmatprep.subr.bf16.mxu0 %v3902_v34 }
 0x2e1   :  { %v1714_v37 = vadd.f32 %v4742_v4, %v1530_v60  ;;  %v1531_v42 = vmax.f32 %v1515_v33, 0.0  ;;  %3404 = vmatpush3.bf16.msra.mxu1 %v3659_v6  ;;  %3483 = vmatprep.mubr.bf16.mxu0 %v1738_v54  ;;  %v4802_v10 = vsel %vm5018_vm6, %v2144_v1, %v2145_v15  ;;  %v4806_v55 = vsel %vm5019_vm13, %v2145_v15, %v2146_v56  ;;  %v3668_v60 = vld [vmem:[#allocation11 + $0x68] sm:$0xff]  }
 0x2e2   :  { %v1732_v48 = vmax.f32 %v1716_v7, 0.0  ;;  %v1717_v47 = vadd.f32 %v1699_v39, %v1533_v43  ;;  %3484 = vmatmul.mubr.bf16.gmra.mrb[40].mxu0 %v4787_v52  ;;  %3405 = vmatprep.subr.bf16.mxu1 %v3660_v28  ;;  %v2972_v4 = vpack.c.bf16 %v4802_v10, %v4793_v22  ;;  %v2975_v6 = vpack.c.bf16 %v4797_v9, %v4806_v55  ;;  %v4879_v9 = vld [vmem:[%s4952_s10] ss:$0 sm:$0xff] }
 0x2e3   :  { %v1730_v19 = vmax.f32 %v1714_v37, 0.0  ;;  %v1715_v27 = vadd.f32 %v1691_v24, %v1531_v42  ;;  %3500 = vmatpush3.bf16.msra.mxu0 %v3675_v51 }
 0x2e4   :  { %v1733_v26 = vmax.f32 %v1717_v47, 0.0  ;;  %v2150_v31 = vrot.slane %v1732_v48, 4  ;;  %v1829_v11 = vpack.c.bf16 %v1732_v48, %v3902_v34  ;;  %3501 = vmatprep.subr.bf16.mxu0 %v3902_v34 }
 0x2e5   :  { %v2148_v5 = vrot.slane %v1730_v19, 4  ;;  %v1731_v16 = vmax.f32 %v1715_v27, 0.0  ;;  %3406 = vmatpush3.bf16.msra.mxu1 %v3660_v28  ;;  %v1828_v56 = vpack.c.bf16 %v1730_v19, %v3902_v34 }
 0x2e6   :  { %v2151_v39 = vrot.slane %v1733_v26, 4  ;;  %3407 = vmatprep.subr.bf16.mxu1 %v3661_v2  ;;  %v1741_v1 = vpack.c.bf16 %v1733_v26, %v1732_v48 }
 0x2e7   :  { %v2149_v53 = vrot.slane %v1731_v16, 4  ;;  %3391 = vmatprep.mubr.bf16.mxu1 %v1828_v56  ;;  %v1740_v23 = vpack.c.bf16 %v1731_v16, %v1730_v19  ;;  %v2155_v40 = vsel %vm5020_vm14, %v2147_v18, %v2148_v5  ;;  %3502 = vmatpush3.bf16.msra.mxu0 %v3676_v12 }
 0x2e8   :  { %3392 = vmatmul.mubr.bf16.gmra.mrb[44].mxu1 %v1829_v11  ;;  %v2167_v24 = vsel %vm5021_vm2, %v2151_v39, %v2136_v57  ;;  %v2152_v46 = vsel %vm5022_vm4, %v2150_v31, %v2151_v39  ;;  %v3664_v57 = vld [vmem:[#allocation11 + $0x48] sm:$0xff]   ;;  %3503 = vmatprep.subr.bf16.mxu0 %v3902_v34 }
 0x2e9   :  { %3408 = vmatpush3.bf16.msra.mxu1 %v3661_v2  ;;  %3411 = vmatprep.mubr.bf16.mxu1 %v4712_v44  ;;  %v2960_v20 = vpack.c.bf16 %v4729_v21, %v2167_v24  ;;  %v2154_v13 = vsel %vm5015_vm0, %v2148_v5, %v2149_v53  ;;  %v2153_v18 = vsel %vm5023_vm5, %v2149_v53, %v2150_v31  ;;  %v3665_v44 = vld [vmem:[#allocation11 + $0x50] sm:$0xff]   ;;  %v3667_v21 = vld [vmem:[#allocation11 + $0x60] sm:$0xff]  }
 0x2ea   :  { %3487 = vmatprep.mubr.bf16.mxu0 %v1740_v23  ;;  %3409 = vmatprep.subr.bf16.mxu1 %v3662_v58  ;;  %v2978_v28 = vpack.c.bf16 %v2154_v13, %v2155_v40  ;;  %v2981_v15 = vpack.c.bf16 %v2152_v46, %v2153_v18 }
 0x2eb   :  { %3488 = vmatmul.mubr.bf16.gmra.mrb[44].mxu0 %v1741_v1 }
 0x2ed   :  { %3410 = vmatpush3.bf16.msra.mxu1 %v3662_v58 }
 0x2ee   :  { %3427 = vmatprep.subr.bf16.mxu1 %v3663_v61 }
 0x2f0   :  { %3412 = vmatmul.mubr.bf16.vlgmr.msra.gmra.mrb[32].mxu1 %v4707_v41  ;;  %v3669_v41 = vld [vmem:[#allocation11 + $0x70] sm:$0xff]  }
 0x2f1   :  { %3428 = vmatpush3.bf16.msra.mxu1 %v3663_v61  ;;  %3415 = vmatprep.mubr.bf16.mxu1 %v4752_v36  ;;  %v3670_v36 = vld [vmem:[#allocation11 + $0x78] sm:$0xff]  }
 0x2f2   :  { %3429 = vmatprep.subr.bf16.mxu1 %v3664_v57 }
 0x2f5   :  { %3430 = vmatpush3.bf16.msra.mxu1 %v3664_v57 }
 0x2f6   :  { %3431 = vmatprep.subr.bf16.mxu1 %v3665_v44 }
 0x2f8   :  { %3416 = vmatmul.mubr.bf16.gmra.mrb[36].mxu1 %v4749_v25 }
 0x2f9   :  { %3432 = vmatpush3.bf16.msra.mxu1 %v3665_v44  ;;  %3419 = vmatprep.mubr.bf16.mxu1 %v1738_v54 }
 0x2fa   :  { %3433 = vmatprep.subr.bf16.mxu1 %v3666_v59 }
 0x2fd   :  { %3434 = vmatpush3.bf16.msra.mxu1 %v3666_v59 }
 0x2fe   :  { %3435 = vmatprep.subr.bf16.mxu1 %v3667_v21 }
 0x300   :  { %3420 = vmatmul.mubr.bf16.gmra.mrb[40].mxu1 %v4787_v52 }
 0x301   :  { %3436 = vmatpush3.bf16.msra.mxu1 %v3667_v21  ;;  %3423 = vmatprep.mubr.bf16.mxu1 %v1740_v23 }
 0x302   :  { %3437 = vmatprep.subr.bf16.mxu1 %v3668_v60 }
 0x305   :  { %3438 = vmatpush3.bf16.msra.mxu1 %v3668_v60 }
 0x306   :  { %3439 = vmatprep.subr.bf16.mxu1 %v3669_v41 }
 0x308   :  { %3424 = vmatmul.mubr.bf16.gmra.mrb[44].mxu1 %v1741_v1 }
 0x309   :  { %3440 = vmatpush3.bf16.msra.mxu1 %v3669_v41  ;;  %3443 = vmatprep.mubr.msk.bf16.mxu1 %vm4375_vm8, %v2960_v20  ;;  %vm3903_vm8 = vmmov 0  }
 0x30a   :  { %3441 = vmatprep.subr.bf16.mxu1 %v3670_v36  ;;  %3507 = vmatprep.mubr.msk.bf16.mxu0 %vm3903_vm8, %v3902_v34 }
 0x30d   :  { %3442 = vmatpush3.bf16.msra.mxu1 %v3670_v36 }
 0x310   :  { %3444 = vmatmul.mubr.msk.bf16.vlgmr.msra.gmra.mrb[32].mxu1 %vm4402_vm9, %v2963_v30  ;;  %v3677_v30 = vld [vmem:[#allocation14 + $0x30] sm:$0xff]   ;;  %vm2711_vm9 = vcmask 1041409  }
 0x311   :  { %3447 = vmatprep.mubr.msk.bf16.mxu1 %vm4413_vm10, %v2966_v38  ;;  %3504 = vmatpush3.bf16.msra.mxu0 %v3677_v30  ;;  %vm2713_vm10 = vcmask 1042434  }
 0x312   :  { %3505 = vmatprep.subr.bf16.mxu0 %v3902_v34  ;;  %v4884_v34 = vld [vmem:[%s4954_s12] ss:$0 sm:$0xff] }
 0x315   :  { %3506 = vmatpush3.bf16.msra.mxu0 %v3678_v49 }
 0x318   :  { %3448 = vmatmul.mubr.msk.bf16.gmra.mrb[36].mxu1 %vm4551_vm11, %v2969_v45  ;;  %vm2715_vm11 = vcmask 1043459  }
 0x319   :  { %3451 = vmatprep.mubr.msk.bf16.mxu1 %vm4560_vm12, %v2972_v4  ;;  %vm2717_vm12 = vcmask 1044484  }
 0x320   :  { %3452 = vmatmul.mubr.msk.bf16.gmra.mrb[40].mxu1 %vm4578_vm15, %v2975_v6  ;;  %vm2719_vm15 = vcmask 1045509  }
 0x321   :  { %3455 = vmatprep.mubr.msk.bf16.mxu1 %vm4583_vm1, %v2978_v28  ;;  %vm2721_vm1 = vcmask 1046534  }
 0x328   :  { %3456 = vmatmul.mubr.msk.bf16.gmra.mrb[44].mxu1 %vm4595_vm3, %v2981_v15  ;;  %vm2723_vm3 = vcmask 1047559  }
 0x3a5   :  { %v3477_v3 = vpop.f32.mrb[32].mxu0 }
 0x3a6   :  { %v2513_v17 = vpop.f32.mrb[33].mxu0  ;;  %v2522_v47 = vadd.f32 %v3477_v3, %v4884_v34 }
 0x3a7   :  { %v3478_v14 = vpop.f32.mrb[34].mxu0  ;;  %v2514_v19 = vadd.f32 %v4884_v34, %v2513_v17 }
 0x3a8   :  { %v2516_v29 = vpop.f32.mrb[35].mxu0  ;;  %v2525_v5 = vadd.f32 %v3478_v14, %v4884_v34 }
 0x3a9   :  { %v2517_v31 = vadd.f32 %v4884_v34, %v2516_v29 }
 0x3ad   :  { %v3481_v25 = vpop.f32.mrb[36].mxu0 }
 0x3ae   :  { %v2529_v63 = vpop.f32.mrb[37].mxu0  ;;  %v2538_v23 = vadd.f32 %v3481_v25, %v4884_v34 }
 0x3af   :  { %v3482_v0 = vpop.f32.mrb[38].mxu0  ;;  %v2530_v13 = vadd.f32 %v4884_v34, %v2529_v63 }
 0x3b0   :  { %v2532_v32 = vpop.f32.mrb[39].mxu0  ;;  %v2541_v57 = vadd.f32 %v3482_v0, %v4884_v34 }
 0x3b1   :  { %v2533_v41 = vadd.f32 %v4884_v34, %v2532_v32 }
 0x3b5   :  { %v3485_v38 = vpop.f32.mrb[40].mxu0 }
 0x3b6   :  { %v2545_v45 = vpop.f32.mrb[41].mxu0  ;;  %v2554_v35 = vadd.f32 %v3485_v38, %v4884_v34 }
 0x3b7   :  { %v3486_v52 = vpop.f32.mrb[42].mxu0  ;;  %v2546_v17 = vadd.f32 %v4884_v34, %v2545_v45 }
 0x3b8   :  { %v2548_v33 = vpop.f32.mrb[43].mxu0  ;;  %v2557_v30 = vadd.f32 %v3486_v52, %v4884_v34 }
 0x3b9   :  { %v2549_v25 = vadd.f32 %v4884_v34, %v2548_v33 }
 0x3be   :  { %v3489_v54 = vpop.f32.mrb[44].mxu0 }
 0x3bf   :  { %v2561_v7 = vpop.f32.mrb[45].mxu0  ;;  %v4907_v49 = vadd.f32 %v3489_v54, %v4884_v34 }
 0x3c0   :  { %v4872_v43 = vpop.f32.mrb[46].mxu0  ;;  %v4910_v32 = vadd.f32 %v4884_v34, %v2561_v7 }
 0x3c1   :  { %v4874_v22 = vpop.f32.mrb[47].mxu0 }
 0x3e3   :  { %v3445_v37 = vpop.f32.mrb[32].mxu1 }
 0x3e4   :  { %v2378_v42 = vadd.f32 %v3445_v37, %v4879_v9  ;;  %v2290_v10 = vpop.f32.mrb[33].mxu1 }
 0x3e5   :  { %v2376_v55 = vadd.f32 %v4879_v9, %v2290_v10  ;;  %v3446_v48 = vpop.f32.mrb[34].mxu1 }
 0x3e6   :  { %v2394_v2 = vmax.f32 %v2378_v42, 0.0  ;;  %v2379_v4 = vadd.f32 %v3446_v48, %v4879_v9  ;;  %v2293_v6 = vpop.f32.mrb[35].mxu1 }
 0x3e7   :  { %v2392_v27 = vmax.f32 %v2376_v55, 0.0  ;;  %v2377_v26 = vadd.f32 %v4879_v9, %v2293_v6 }
 0x3e8   :  { %v2578_v16 = vadd.f32 %v2522_v47, %v2394_v2  ;;  %v2395_v56 = vmax.f32 %v2379_v4, 0.0 }
 0x3e9   :  { %v2576_v39 = vadd.f32 %v2514_v19, %v2392_v27  ;;  %v2393_v11 = vmax.f32 %v2377_v26, 0.0 }
 0x3ea   :  { %v2579_v1 = vadd.f32 %v2525_v5, %v2395_v56  ;;  %v2594_v40 = vmax.f32 %v2578_v16, 0.0 }
 0x3eb   :  { %v2577_v58 = vadd.f32 %v2517_v31, %v2393_v11  ;;  %v3449_v53 = vpop.f32.mrb[36].mxu1  ;;  %v2592_v18 = vmax.f32 %v2576_v39, 0.0 }
 0x3ec   :  { %v2595_v24 = vmax.f32 %v2579_v1, 0.0  ;;  %v2382_v46 = vadd.f32 %v3449_v53, %v4879_v9  ;;  %v2306_v20 = vpop.f32.mrb[37].mxu1 }
 0x3ed   :  { %v2593_v61 = vmax.f32 %v2577_v58, 0.0  ;;  %v2380_v28 = vadd.f32 %v4879_v9, %v2306_v20  ;;  %v3450_v15 = vpop.f32.mrb[38].mxu1 }
 0x3ee   :  { %v2615_v44 = vadd.f32 %v2595_v24, %v2594_v40  ;;  %v2398_v59 = vmax.f32 %v2382_v46, 0.0  ;;  %v2383_v21 = vadd.f32 %v3450_v15, %v4879_v9  ;;  %v2309_v60 = vpop.f32.mrb[39].mxu1 }
 0x3ef   :  { %v2608_v36 = vadd.f32 %v2593_v61, %v2592_v18  ;;  %v2396_v8 = vmax.f32 %v2380_v28, 0.0  ;;  %v2381_v62 = vadd.f32 %v4879_v9, %v2309_v60 }
 0x3f0   :  { %v2616_v50 = vrot.slane %v2615_v44, 4  ;;  %v2582_v51 = vadd.f32 %v2538_v23, %v2398_v59  ;;  %v2399_v3 = vmax.f32 %v2383_v21, 0.0 }
 0x3f1   :  { %v2609_v14 = vrot.slane %v2608_v36, 4  ;;  %v2580_v12 = vadd.f32 %v2530_v13, %v2396_v8  ;;  %v2397_v29 = vmax.f32 %v2381_v62, 0.0 }
 0x3f2   :  { %v2617_v63 = vadd.f32 %v2616_v50, %v2615_v44  ;;  %v2583_v0 = vadd.f32 %v2541_v57, %v2399_v3  ;;  %v2598_v45 = vmax.f32 %v2582_v51, 0.0 }
 0x3f3   :  { %v2610_v38 = vadd.f32 %v2609_v14, %v2608_v36  ;;  %v2581_v37 = vadd.f32 %v2533_v41, %v2397_v29  ;;  %v3453_v42 = vpop.f32.mrb[40].mxu1  ;;  %v2596_v2 = vmax.f32 %v2580_v12, 0.0 }
 0x3f4   :  { %v2618_v10 = vrot.slane %v2617_v63, 2  ;;  %v2599_v55 = vmax.f32 %v2583_v0, 0.0  ;;  %v2386_v48 = vadd.f32 %v3453_v42, %v4879_v9  ;;  %v2322_v47 = vpop.f32.mrb[41].mxu1 }
 0x3f5   :  { %v2611_v52 = vrot.slane %v2610_v38, 2  ;;  %v2597_v33 = vmax.f32 %v2581_v37, 0.0  ;;  %v2384_v4 = vadd.f32 %v4879_v9, %v2322_v47  ;;  %v3454_v6 = vpop.f32.mrb[42].mxu1 }
 0x3f6   :  { %v2619_v54 = vadd.f32 %v2618_v10, %v2617_v63  ;;  %v2629_v19 = vadd.f32 %v2599_v55, %v2598_v45  ;;  %v2402_v7 = vmax.f32 %v2386_v48, 0.0  ;;  %v2387_v27 = vadd.f32 %v3454_v6, %v4879_v9  ;;  %v2325_v26 = vpop.f32.mrb[43].mxu1 }
 0x3f7   :  { %v2612_v5 = vadd.f32 %v2611_v52, %v2610_v38  ;;  %v2622_v16 = vadd.f32 %v2597_v33, %v2596_v2  ;;  %v2400_v56 = vmax.f32 %v2384_v4, 0.0  ;;  %v2385_v31 = vadd.f32 %v4879_v9, %v2325_v26 }
 0x3f8   :  { %v2620_v39 = vrot.slane %v2619_v54, 1  ;;  %v2630_v11 = vrot.slane %v2629_v19, 4  ;;  %v2586_v1 = vadd.f32 %v2554_v35, %v2402_v7  ;;  %v2403_v58 = vmax.f32 %v2387_v27, 0.0 }
 0x3f9   :  { %v2613_v53 = vrot.slane %v2612_v5, 1  ;;  %v2623_v23 = vrot.slane %v2622_v16, 4  ;;  %v2584_v40 = vadd.f32 %v2546_v17, %v2400_v56  ;;  %v2401_v24 = vmax.f32 %v2385_v31, 0.0 }
 0x3fa   :  { %v2621_v46 = vadd.f32 %v2620_v39, %v2619_v54  ;;  %v2631_v20 = vadd.f32 %v2630_v11, %v2629_v19  ;;  %v2602_v13 = vmax.f32 %v2586_v1, 0.0  ;;  %v2587_v18 = vadd.f32 %v2557_v30, %v2403_v58 }
 0x3fb   :  { %v2614_v61 = vadd.f32 %v2613_v53, %v2612_v5  ;;  %v2624_v28 = vadd.f32 %v2623_v23, %v2622_v16  ;;  %v2600_v15 = vmax.f32 %v2584_v40, 0.0  ;;  %v2585_v57 = vadd.f32 %v2549_v25, %v2401_v24  ;;  %v3457_v44 = vpop.f32.mrb[44].mxu1 }
 0x3fc   :  { %v2665_v59 = vpack.c.bf16 %v2621_v46, %v2621_v46  ;;  %v2632_v21 = vrot.slane %v2631_v20, 2  ;;  %v2603_v60 = vmax.f32 %v2587_v18, 0.0  ;;  %v2390_v41 = vadd.f32 %v3457_v44, %v4879_v9  ;;  %v2338_v36 = vpop.f32.mrb[45].mxu1 }
 0x3fd   :  { %v2664_v8 = vpack.c.bf16 %v2614_v61, %v2614_v61  ;;  %v2625_v62 = vrot.slane %v2624_v28, 2  ;;  %v2601_v35 = vmax.f32 %v2585_v57, 0.0  ;;  %v2388_v50 = vadd.f32 %v4879_v9, %v2338_v36  ;;  %v3458_v51 = vpop.f32.mrb[46].mxu1 }
 0x3fe   :  { %v2704_v3 = vunpack.c.l.b16 %v2665_v59  ;;  %v2633_v17 = vadd.f32 %v2632_v21, %v2631_v20  ;;  %v2643_v14 = vadd.f32 %v2603_v60, %v2602_v13  ;;  %v2406_v12 = vmax.f32 %v2390_v41, 0.0  ;;  %v2341_v29 = vpop.f32.mrb[47].mxu1 }
 0x3ff   :  { %v2703_v30 = vunpack.c.l.b16 %v2664_v8  ;;  %v2626_v25 = vadd.f32 %v2625_v62, %v2624_v28  ;;  %v2636_v63 = vadd.f32 %v2601_v35, %v2600_v15  ;;  %v2404_v0 = vmax.f32 %v2388_v50, 0.0 }
 0x400   :  { %v2634_v38 = vrot.slane %v2633_v17, 1  ;;  %v2644_v37 = vrot.slane %v2643_v14, 4  ;;  %v2590_v42 = vadd.f32 %v4907_v49, %v2406_v12  ;;  %v2391_v10 = vadd.f32 %v3458_v51, %v4879_v9 }
 0x401   :  { %v2712_v45 = vsel %vm2711_vm9, %v2704_v3, %v2703_v30  ;;  %v2627_v55 = vrot.slane %v2626_v25, 1  ;;  %v2637_v48 = vrot.slane %v2636_v63, 4  ;;  %v2588_v47 = vadd.f32 %v4910_v32, %v2404_v0 }
 0x402   :  { %v2573_v52 = vadd.f32 %v4872_v43, %v4884_v34  ;;  %v2635_v2 = vadd.f32 %v2634_v38, %v2633_v17  ;;  %v2645_v33 = vadd.f32 %v2644_v37, %v2643_v14  ;;  %v2407_v4 = vmax.f32 %v2391_v10, 0.0  ;;  %v2993_v38 = vld [vmem:[%s4956_s14] ss:$0 sm:$0xff] }
 0x403   :  { %v2628_v6 = vadd.f32 %v2627_v55, %v2626_v25  ;;  %v2638_v54 = vadd.f32 %v2637_v48, %v2636_v63  ;;  %v2389_v19 = vadd.f32 %v4879_v9, %v2341_v29  ;;  %v2565_v26 = vadd.f32 %v4884_v34, %v4874_v22 }
 0x404   :  { %v2667_v7 = vpack.c.bf16 %v2635_v2, %v2635_v2  ;;  %v2646_v49 = vrot.slane %v2645_v33, 2  ;;  %v2591_v27 = vadd.f32 %v2573_v52, %v2407_v4  ;;  %v2606_v31 = vmax.f32 %v2590_v42, 0.0 }
 0x405   :  { %v2666_v5 = vpack.c.bf16 %v2628_v6, %v2628_v6  ;;  %v2639_v16 = vrot.slane %v2638_v54, 2  ;;  %v2405_v56 = vmax.f32 %v2389_v19, 0.0  ;;  %v2604_v24 = vmax.f32 %v2588_v47, 0.0 }
 0x406   :  { %v2647_v32 = vadd.f32 %v2646_v49, %v2645_v33  ;;  %v2607_v43 = vmax.f32 %v2591_v27, 0.0  ;;  %v2706_v58 = vunpack.c.l.b16 %v2667_v7 }
 0x407   :  { %v2705_v39 = vunpack.c.l.b16 %v2666_v5  ;;  %v2640_v11 = vadd.f32 %v2639_v16, %v2638_v54  ;;  %v2589_v1 = vadd.f32 %v2565_v26, %v2405_v56 }
 0x408   :  { %v2648_v53 = vrot.slane %v2647_v32, 1  ;;  %v2657_v9 = vadd.f32 %v2607_v43, %v2606_v31 }
 0x409   :  { %v2714_v23 = vsel %vm2713_vm10, %v2705_v39, %v2712_v45  ;;  %v2641_v40 = vrot.slane %v2640_v11, 1  ;;  %v2605_v46 = vmax.f32 %v2589_v1, 0.0 }
 0x40a   :  { %v2649_v20 = vadd.f32 %v2648_v53, %v2647_v32  ;;  %v2716_v22 = vsel %vm2715_vm11, %v2706_v58, %v2714_v23  ;;  %v2658_v34 = vrot.slane %v2657_v9, 4 }
 0x40b   :  { %v2642_v13 = vadd.f32 %v2641_v40, %v2640_v11  ;;  %v2650_v18 = vadd.f32 %v2605_v46, %v2604_v24 }
 0x40c   :  { %v2669_v61 = vpack.c.bf16 %v2649_v20, %v2649_v20  ;;  %v2659_v28 = vadd.f32 %v2658_v34, %v2657_v9 }
 0x40d   :  { %v2668_v15 = vpack.c.bf16 %v2642_v13, %v2642_v13  ;;  %v2651_v57 = vrot.slane %v2650_v18, 4 }
 0x40e   :  { %v2660_v44 = vrot.slane %v2659_v28, 2  ;;  %v2708_v60 = vunpack.c.l.b16 %v2669_v61 }
 0x40f   :  { %v2707_v59 = vunpack.c.l.b16 %v2668_v15  ;;  %v2652_v21 = vadd.f32 %v2651_v57, %v2650_v18 }
 0x410   :  { %v2661_v41 = vadd.f32 %v2660_v44, %v2659_v28 }
 0x411   :  { %v2718_v36 = vsel %vm2717_vm12, %v2707_v59, %v2716_v22  ;;  %v2653_v8 = vrot.slane %v2652_v21, 2 }
 0x412   :  { %v2662_v62 = vrot.slane %v2661_v41, 1  ;;  %v2720_v35 = vsel %vm2719_vm15, %v2708_v60, %v2718_v36 }
 0x413   :  { %v2654_v50 = vadd.f32 %v2653_v8, %v2652_v21 }
 0x414   :  { %v2663_v51 = vadd.f32 %v2662_v62, %v2661_v41 }
 0x415   :  { %v2655_v3 = vrot.slane %v2654_v50, 1 }
 0x416   :  { %v2671_v14 = vpack.c.bf16 %v2663_v51, %v2663_v51 }
 0x417   :  { %v2656_v17 = vadd.f32 %v2655_v3, %v2654_v50 }
 0x418   :  { %v2710_v30 = vunpack.c.l.b16 %v2671_v14 }
 0x419   :  { %v2670_v12 = vpack.c.bf16 %v2656_v17, %v2656_v17 }
 0x41b   :  { %v2709_v29 = vunpack.c.l.b16 %v2670_v12 }
 0x41d   :  { %v2722_v25 = vsel %vm2721_vm1, %v2709_v29, %v2720_v35 }
 0x41e   :  { %v2724_v63 = vsel %vm2723_vm3, %v2710_v30, %v2722_v25 }
 0x41f   :  { %v2725_v0 = vpack.c.b16 %v2724_v63, %v2724_v63 }
 0x421   :  { %3508 = vmatmul.mubr.bf16.vlgmr.msra.gmra.mrb[48].mxu0 %v2725_v0 }
 0x4f4   :  { %v2809_v37 = vpop.f32.mrb[48].mxu0 }
 0x4f5   :  { %v2810_v42 = vadd.f32 %v2993_v38, %v2809_v37  ;;  %v3509_v10 = vpop.f32.mrb[49].mxu0 }
 0x4f6   :  { %v2812_v45 = vpop.f32.mrb[50].mxu0 }
 0x4f7   :  { %2815 = vst [vmem:[#allocation16] sm:$0xff] %v2810_v42  ;;  %v3510_v55 = vpop.f32.mrb[51].mxu0 }
 0x4f8   :  { %3866 = shalt.err (!%p3863_p12)
}
 0x4f9   :  { %s5024_s24 = sld [smem:[#allocation23_spill]] }
 0x4ff   :  { %s3867_s14 = scalar_lea.hbm %s5024_s24, 128 }
 0x500   :  { %p3868_p13 = scmp.ne.s32.totalorder %s5024_s24, %s3867_s14  ;;  %p3871_p0 = scmp.lt.u32.totalorder %s3867_s14, %s5024_s24 }
 0x502   :  { %p3873_p1 = pnand %p3871_p0, %p3868_p13 }
 0x504   :  { %3876 = shalt.err (!%p3873_p1)
}
 0x505   :  { %2825 = dma.vmem_to_hbm [thread:$0]  %s2823_s21, 128, %s5024_s24, [#allocation4]  }
 0x506   :  { %3887 = dma.done.wait [#allocation4], 128  }
 0x507   :  { %3888 = vsyncadd [#allocation4], 4294967168 }
 0x508   :  { %2829 = vsyncpa [#allocation3], 1 }
 0x509   :  { %2830 = vsyncpa [#allocation6], 1 }
 0x50a   :  { %2831 = vsyncpa [#allocation9], 1 }
 0x50b   :  { %2832 = vsyncpa [#allocation12], 1 }
 0x50c   :  { %2833 = vsyncpa [#allocation15], 1 }
 0x50d   :  { %2834 = vsyncpa [#allocation4], 1 }

</bundles_post_ra>
